<compile_context>
chip_gen: v7x
topology: tpu7x:2x2x1
jax: 0.10.0
libtpu: 0.0.40
codegen_flags: <defaults>
</compile_context>

<pallas_src>
import jax
import jax.numpy as jnp
from jax import lax
from jax.experimental import pallas as pl
from jax.experimental.pallas import tpu as pltpu

INPUT_SIZE = 16
HIDDEN = 32
NUM_LAYERS = 2
OUTPUT_SIZE = 6
OUT_PAD = 128            # lane-dense padded fc output width (>= OUTPUT_SIZE)
GATES = 4 * HIDDEN       # 128 -> one full lane-dense gate tile
SUBLANE = 8              # f32 sublane tile


def _sigmoid_ref(x):
    # Reference logistic (matches PyTorch's sigmoid).
    return 1.0 / (1.0 + jnp.exp(-x))


def make_lstm_kernel(num_layers, hidden, seq_len, batch, in_size):
    H = hidden
    G = 4 * H
    T = seq_len
    B = batch

    def sigmoid(x):
        # Single tanh EUP push; mathematically identical to 1/(1+exp(-x)).
        return 0.5 * jnp.tanh(0.5 * x) + 0.5

    def kernel(x_ref, *refs):
        # refs layout: [w_ih, w_hh, b] * num_layers, w_fc, b_fc,
        #              o_ref, pre_scr, hseq_scr
        n_lw = 3 * num_layers
        layer_w = refs[:n_lw]
        w_fc_ref = refs[n_lw]
        b_fc_ref = refs[n_lw + 1]
        o_ref = refs[n_lw + 2]
        pre_scr = refs[n_lw + 3]     # (T*B, 4H)  hoisted input projection
        hseq_scr = refs[n_lw + 4]    # (T*B, H)   previous layer's h sequence

        h_last = None
        for l in range(num_layers):
            w_ih_ref, w_hh_ref, b_ref = layer_w[3 * l:3 * l + 3]

            # Hoisted input projection for the WHOLE sequence: one big MXU
            # matmul (M = T*B) instead of T tiny ones on the serial chain.
            layer_in = x_ref[...] if l == 0 else hseq_scr[...]
            pre_scr[...] = (
                jnp.dot(layer_in, w_ih_ref[...],
                        preferred_element_type=jnp.float32)
                + b_ref[...]
            )

            w_hh = w_hh_ref[...]
            write_hseq = (l != num_layers - 1)

            def step(t, carry, w_hh=w_hh, write_hseq=write_hseq):
                h_prev, c_prev = carry
                off = pl.multiple_of(t * B, B)
                # Only the recurrent matmul stays on the serialized path.
                gates = pre_scr[pl.ds(off, B), :] + jnp.dot(
                    h_prev, w_hh, preferred_element_type=jnp.float32)
                s = sigmoid(gates)        # one EUP push: i, f, o lanes
                th = jnp.tanh(gates)      # one EUP push: g lanes
                i_g = s[:, 0 * H:1 * H]
                f_g = s[:, 1 * H:2 * H]
                g_g = th[:, 2 * H:3 * H]
                o_g = s[:, 3 * H:4 * H]
                c_new = f_g * c_prev + i_g * g_g
                h_new = o_g * jnp.tanh(c_new)   # third EUP push
                if write_hseq:
                    hseq_scr[pl.ds(off, B), :] = h_new
                return (h_new, c_new)

            h0 = jnp.zeros((B, H), jnp.float32)
            c0 = jnp.zeros((B, H), jnp.float32)
            h_last, _ = lax.fori_loop(0, T, step, (h0, c0), unroll=True)

        # fc projection of the last layer's final hidden state; lane-dense
        # 128-wide store (padding columns are exactly zero).
        y = (jnp.dot(h_last, w_fc_ref[...], preferred_element_type=jnp.float32)
             + b_fc_ref[...])
        o_ref[...] = y.astype(o_ref.dtype)

    return kernel


def lstm_forward(x, params):
    """x: (B, T, INPUT_SIZE) f32 -> (B, OUTPUT_SIZE) f32 (one LSTM + fc pass)."""
    B_in, T, I = x.shape
    # Pad batch to the 8-row sublane tile (zero rows are discarded afterwards).
    B = max(SUBLANE, ((B_in + SUBLANE - 1) // SUBLANE) * SUBLANE)
    xt = jnp.transpose(x, (1, 0, 2))                 # time-major (T, B_in, I)
    if B != B_in:
        xt = jnp.pad(xt, ((0, 0), (0, B - B_in), (0, 0)))
    x2d = xt.reshape(T * B, I)                       # whole sequence, 2-D

    layer_args = []
    for (w_ih, w_hh, b) in params["layers"]:
        layer_args += [w_ih, w_hh, b]
    w_fc, b_fc = params["w_fc"], params["b_fc"]

    n_inputs = 1 + len(layer_args) + 2
    vmem_spec = pl.BlockSpec(memory_space=pltpu.MemorySpace.VMEM)

    # Advisory cost estimate (tiny, latency-bound custom call).
    flops = 2 * B * HIDDEN * OUT_PAD
    in_size = I
    for _ in range(NUM_LAYERS):
        flops += 2 * T * B * (in_size + HIDDEN) * GATES
        in_size = HIDDEN
    transcendentals = T * NUM_LAYERS * B * (2 * GATES + HIDDEN)
    bytes_accessed = (x2d.size + B * OUT_PAD
                      + sum(a.size for a in layer_args)
                      + w_fc.size + b_fc.size) * 4

    out = pl.pallas_call(
        make_lstm_kernel(NUM_LAYERS, HIDDEN, T, B, I),
        out_shape=jax.ShapeDtypeStruct((B, OUT_PAD), jnp.float32),
        in_specs=[vmem_spec] * n_inputs,
        out_specs=vmem_spec,
        scratch_shapes=[
            pltpu.VMEM((T * B, GATES), jnp.float32),   # hoisted gate pre-proj
            pltpu.VMEM((T * B, HIDDEN), jnp.float32),  # layer h sequence
        ],
        cost_estimate=pl.CostEstimate(
            flops=flops,
            transcendentals=transcendentals,
            bytes_accessed=bytes_accessed,
        ),
    )(x2d, *layer_args, w_fc, b_fc)
    return out[:B_in, :OUTPUT_SIZE]


def lstm_model(x, x1, x2, params):
    """Forward of LSTMModel: same LSTM + fc applied to x, x1, x2."""
    if x.shape == x1.shape == x2.shape:
        # Shared weights, independent batches -> fuse into ONE kernel launch.
        b = x.shape[0]
        out = lstm_forward(jnp.concatenate([x, x1, x2], axis=0), params)
        return out[:b], out[b:2 * b], out[2 * b:3 * b]
    return tuple(lstm_forward(xi, params) for xi in (x, x1, x2))


def init_params(key):
    """Deterministic init matching PyTorch LSTM/Linear shapes.

    PyTorch stores weight_ih_l{k} as (4H, in); we keep the transposed
    (in, 4H) layout (gate order i, f, g, o) so the kernel computes x @ W."""
    keys = jax.random.split(key, 4 * NUM_LAYERS + 2)
    bound = 1.0 / (HIDDEN ** 0.5)
    layers, in_size = [], INPUT_SIZE
    for l in range(NUM_LAYERS):
        k_wi, k_wh, k_bi, k_bh = keys[4 * l:4 * l + 4]
        w_ih = jax.random.uniform(k_wi, (in_size, GATES), jnp.float32, -bound, bound)
        w_hh = jax.random.uniform(k_wh, (HIDDEN, GATES), jnp.float32, -bound, bound)
        b_ih = jax.random.uniform(k_bi, (1, GATES), jnp.float32, -bound, bound)
        b_hh = jax.random.uniform(k_bh, (1, GATES), jnp.float32, -bound, bound)
        layers.append((w_ih, w_hh, b_ih + b_hh))   # fold the two biases
        in_size = HIDDEN
    k_wf, k_bf = keys[4 * NUM_LAYERS:4 * NUM_LAYERS + 2]
    w_fc = jax.random.uniform(k_wf, (HIDDEN, OUTPUT_SIZE), jnp.float32, -bound, bound)
    b_fc = jax.random.uniform(k_bf, (1, OUTPUT_SIZE), jnp.float32, -bound, bound)
    # Zero-pad fc to a lane-dense 128-wide output tile (padding stays exactly 0).
    w_fc_pad = jnp.zeros((HIDDEN, OUT_PAD), jnp.float32).at[:, :OUTPUT_SIZE].set(w_fc)
    b_fc_pad = jnp.zeros((1, OUT_PAD), jnp.float32).at[:, :OUTPUT_SIZE].set(b_fc)
    return {"layers": layers, "w_fc": w_fc_pad, "b_fc": b_fc_pad}


def lstm_reference(x, params):
    """Pure-JAX reference LSTM + fc (same math, no Pallas)."""
    hp = jax.lax.Precision.HIGHEST
    B, T, _ = x.shape
    h = [jnp.zeros((B, HIDDEN), jnp.float32) for _ in range(NUM_LAYERS)]
    c = [jnp.zeros((B, HIDDEN), jnp.float32) for _ in range(NUM_LAYERS)]
    for t in range(T):
        inp = x[:, t, :]
        for l in range(NUM_LAYERS):
            w_ih, w_hh, b = params["layers"][l]
            gates = (jnp.dot(inp, w_ih, precision=hp)
                     + jnp.dot(h[l], w_hh, precision=hp) + b)
            i_g = _sigmoid_ref(gates[:, 0 * HIDDEN:1 * HIDDEN])
            f_g = _sigmoid_ref(gates[:, 1 * HIDDEN:2 * HIDDEN])
            g_g = jnp.tanh(gates[:, 2 * HIDDEN:3 * HIDDEN])
            o_g = _sigmoid_ref(gates[:, 3 * HIDDEN:4 * HIDDEN])
            c[l] = f_g * c[l] + i_g * g_g
            h[l] = o_g * jnp.tanh(c[l])
            inp = h[l]
    return (jnp.dot(h[-1], params["w_fc"][:, :OUTPUT_SIZE], precision=hp)
            + params["b_fc"][:, :OUTPUT_SIZE])


if __name__ == "__main__":
    key = jax.random.PRNGKey(0)
    kx, kx1, kx2, kp = jax.random.split(key, 4)

    B, T = 2, 8
    x = jax.random.normal(kx, (B, T, INPUT_SIZE), jnp.float32)
    x1 = jax.random.normal(kx1, (B, T, INPUT_SIZE), jnp.float32)
    x2 = jax.random.normal(kx2, (B, T, INPUT_SIZE), jnp.float32)
    params = init_params(kp)

    out, out1, out2 = lstm_model(x, x1, x2, params)
    out, out1, out2 = jax.block_until_ready((out, out1, out2))

    ref = lstm_reference(x, params)
    ref1 = lstm_reference(x1, params)
    ref2 = lstm_reference(x2, params)

    assert out.shape == (B, OUTPUT_SIZE)
    assert out1.shape == (B, OUTPUT_SIZE)
    assert out2.shape == (B, OUTPUT_SIZE)
    assert jnp.allclose(out, ref, atol=2e-4, rtol=2e-4), "mismatch vs reference (x)"
    assert jnp.allclose(out1, ref1, atol=2e-4, rtol=2e-4), "mismatch vs reference (x1)"
    assert jnp.allclose(out2, ref2, atol=2e-4, rtol=2e-4), "mismatch vs reference (x2)"

    print("KERNEL_OK")
</pallas_src>

<mosaic_0001>
module attributes {stable_mosaic.version = 11 : i64} {
  func.func @kernel(%arg0: memref<64x16xf32, #tpu.memory_space<vmem>>, %arg1: memref<16x128xf32, #tpu.memory_space<vmem>>, %arg2: memref<32x128xf32, #tpu.memory_space<vmem>>, %arg3: memref<1x128xf32, #tpu.memory_space<vmem>>, %arg4: memref<32x128xf32, #tpu.memory_space<vmem>>, %arg5: memref<32x128xf32, #tpu.memory_space<vmem>>, %arg6: memref<1x128xf32, #tpu.memory_space<vmem>>, %arg7: memref<32x128xf32, #tpu.memory_space<vmem>>, %arg8: memref<1x128xf32, #tpu.memory_space<vmem>>, %arg9: memref<8x128xf32, #tpu.memory_space<vmem>>, %arg10: memref<64x128xf32, #tpu.memory_space<vmem>>, %arg11: memref<64x32xf32, #tpu.memory_space<vmem>>) attributes {dimension_semantics = [], scalar_prefetch = 0 : i64, scratch_operands = 2 : i64, tpu.core_type = #tpu.core_type<tc>} {
    %c0 = arith.constant 0 : index
    %c0_0 = arith.constant 0 : index
    %0 = vector.load %arg0[%c0, %c0_0] : memref<64x16xf32, #tpu.memory_space<vmem>>, vector<64x16xf32>
    %c0_1 = arith.constant 0 : index
    %c0_2 = arith.constant 0 : index
    %1 = vector.load %arg1[%c0_1, %c0_2] : memref<16x128xf32, #tpu.memory_space<vmem>>, vector<16x128xf32>
    %cst = arith.constant dense<0.000000e+00> : vector<64x128xf32>
    %2 = tpu.matmul %0, %1, %cst {dimension_numbers = #tpu.dot_dimension_numbers<[1], [0], [0], [1], [0, 0, 1, 1], [], []>} : vector<64x16xf32>, vector<16x128xf32>, vector<64x128xf32> -> vector<64x128xf32>
    %c0_3 = arith.constant 0 : index
    %c0_4 = arith.constant 0 : index
    %3 = vector.load %arg3[%c0_3, %c0_4] : memref<1x128xf32, #tpu.memory_space<vmem>>, vector<1x128xf32>
    %4 = vector.broadcast %3 : vector<1x128xf32> to vector<64x128xf32>
    %5 = arith.addf %2, %4 : vector<64x128xf32>
    %c0_5 = arith.constant 0 : index
    %c0_6 = arith.constant 0 : index
    %6 = vector.load %arg10[%c0_5, %c0_6] : memref<64x128xf32, #tpu.memory_space<vmem>>, vector<64x128xf32>
    tpu.vector_store %arg10[%c0_5, %c0_6], %5 {strides = array<i32>} : memref<64x128xf32, #tpu.memory_space<vmem>>, vector<64x128xf32>,
    %c0_7 = arith.constant 0 : index
    %c0_8 = arith.constant 0 : index
    %7 = vector.load %arg2[%c0_7, %c0_8] : memref<32x128xf32, #tpu.memory_space<vmem>>, vector<32x128xf32>
    %cst_9 = arith.constant 0.000000e+00 : f32
    %8 = vector.broadcast %cst_9 : f32 to vector<8x32xf32>
    %cst_10 = arith.constant 0.000000e+00 : f32
    %9 = vector.broadcast %cst_10 : f32 to vector<8x32xf32>
    %c0_i32 = arith.constant 0 : i32
    %c8_i32 = arith.constant 8 : i32
    %10 = arith.muli %c0_i32, %c8_i32 : i32
    %11 = tpu.assume_multiple %10, 8 : i32
    %12 = arith.index_cast %11 : i32 to index
    %c0_11 = arith.constant 0 : index
    %13 = vector.load %arg10[%12, %c0_11] : memref<64x128xf32, #tpu.memory_space<vmem>>, vector<8x128xf32>
    %cst_12 = arith.constant dense<0.000000e+00> : vector<8x128xf32>
    %14 = tpu.matmul %8, %7, %cst_12 {dimension_numbers = #tpu.dot_dimension_numbers<[1], [0], [0], [1], [0, 0, 1, 1], [], []>} : vector<8x32xf32>, vector<32x128xf32>, vector<8x128xf32> -> vector<8x128xf32>
    %15 = arith.addf %13, %14 : vector<8x128xf32>
    %cst_13 = arith.constant 5.000000e-01 : f32
    %16 = vector.broadcast %cst_13 : f32 to vector<8x128xf32>
    %17 = arith.mulf %16, %15 : vector<8x128xf32>
    %18 = math.tanh %17 : vector<8x128xf32>
    %cst_14 = arith.constant 5.000000e-01 : f32
    %19 = vector.broadcast %cst_14 : f32 to vector<8x128xf32>
    %20 = arith.mulf %19, %18 : vector<8x128xf32>
    %cst_15 = arith.constant 5.000000e-01 : f32
    %21 = vector.broadcast %cst_15 : f32 to vector<8x128xf32>
    %22 = arith.addf %20, %21 : vector<8x128xf32>
    %23 = math.tanh %15 : vector<8x128xf32>
    %24 = vector.extract_strided_slice %22 {offsets = [0, 0], sizes = [8, 32], strides = [1, 1]} : vector<8x128xf32> to vector<8x32xf32>
    %25 = vector.extract_strided_slice %22 {offsets = [0, 32], sizes = [8, 32], strides = [1, 1]} : vector<8x128xf32> to vector<8x32xf32>
    %26 = vector.extract_strided_slice %23 {offsets = [0, 64], sizes = [8, 32], strides = [1, 1]} : vector<8x128xf32> to vector<8x32xf32>
    %27 = vector.extract_strided_slice %22 {offsets = [0, 96], sizes = [8, 32], strides = [1, 1]} : vector<8x128xf32> to vector<8x32xf32>
    %28 = arith.mulf %25, %9 : vector<8x32xf32>
    %29 = arith.mulf %24, %26 : vector<8x32xf32>
    %30 = arith.addf %28, %29 : vector<8x32xf32>
    %31 = math.tanh %30 : vector<8x32xf32>
    %32 = arith.mulf %27, %31 : vector<8x32xf32>
    %33 = arith.index_cast %11 : i32 to index
    %c0_16 = arith.constant 0 : index
    %34 = vector.load %arg11[%33, %c0_16] : memref<64x32xf32, #tpu.memory_space<vmem>>, vector<8x32xf32>
    tpu.vector_store %arg11[%33, %c0_16], %32 {strides = array<i32>} : memref<64x32xf32, #tpu.memory_space<vmem>>, vector<8x32xf32>,
    %c1_i32 = arith.constant 1 : i32
    %c8_i32_17 = arith.constant 8 : i32
    %35 = arith.muli %c1_i32, %c8_i32_17 : i32
    %36 = tpu.assume_multiple %35, 8 : i32
    %37 = arith.index_cast %36 : i32 to index
    %c0_18 = arith.constant 0 : index
    %38 = vector.load %arg10[%37, %c0_18] : memref<64x128xf32, #tpu.memory_space<vmem>>, vector<8x128xf32>
    %cst_19 = arith.constant dense<0.000000e+00> : vector<8x128xf32>
    %39 = tpu.matmul %32, %7, %cst_19 {dimension_numbers = #tpu.dot_dimension_numbers<[1], [0], [0], [1], [0, 0, 1, 1], [], []>} : vector<8x32xf32>, vector<32x128xf32>, vector<8x128xf32> -> vector<8x128xf32>
    %40 = arith.addf %38, %39 : vector<8x128xf32>
    %cst_20 = arith.constant 5.000000e-01 : f32
    %41 = vector.broadcast %cst_20 : f32 to vector<8x128xf32>
    %42 = arith.mulf %41, %40 : vector<8x128xf32>
    %43 = math.tanh %42 : vector<8x128xf32>
    %cst_21 = arith.constant 5.000000e-01 : f32
    %44 = vector.broadcast %cst_21 : f32 to vector<8x128xf32>
    %45 = arith.mulf %44, %43 : vector<8x128xf32>
    %cst_22 = arith.constant 5.000000e-01 : f32
    %46 = vector.broadcast %cst_22 : f32 to vector<8x128xf32>
    %47 = arith.addf %45, %46 : vector<8x128xf32>
    %48 = math.tanh %40 : vector<8x128xf32>
    %49 = vector.extract_strided_slice %47 {offsets = [0, 0], sizes = [8, 32], strides = [1, 1]} : vector<8x128xf32> to vector<8x32xf32>
    %50 = vector.extract_strided_slice %47 {offsets = [0, 32], sizes = [8, 32], strides = [1, 1]} : vector<8x128xf32> to vector<8x32xf32>
    %51 = vector.extract_strided_slice %48 {offsets = [0, 64], sizes = [8, 32], strides = [1, 1]} : vector<8x128xf32> to vector<8x32xf32>
    %52 = vector.extract_strided_slice %47 {offsets = [0, 96], sizes = [8, 32], strides = [1, 1]} : vector<8x128xf32> to vector<8x32xf32>
    %53 = arith.mulf %50, %30 : vector<8x32xf32>
    %54 = arith.mulf %49, %51 : vector<8x32xf32>
    %55 = arith.addf %53, %54 : vector<8x32xf32>
    %56 = math.tanh %55 : vector<8x32xf32>
    %57 = arith.mulf %52, %56 : vector<8x32xf32>
    %58 = arith.index_cast %36 : i32 to index
    %c0_23 = arith.constant 0 : index
    %59 = vector.load %arg11[%58, %c0_23] : memref<64x32xf32, #tpu.memory_space<vmem>>, vector<8x32xf32>
    tpu.vector_store %arg11[%58, %c0_23], %57 {strides = array<i32>} : memref<64x32xf32, #tpu.memory_space<vmem>>, vector<8x32xf32>,
    %c2_i32 = arith.constant 2 : i32
    %c8_i32_24 = arith.constant 8 : i32
    %60 = arith.muli %c2_i32, %c8_i32_24 : i32
    %61 = tpu.assume_multiple %60, 8 : i32
    %62 = arith.index_cast %61 : i32 to index
    %c0_25 = arith.constant 0 : index
    %63 = vector.load %arg10[%62, %c0_25] : memref<64x128xf32, #tpu.memory_space<vmem>>, vector<8x128xf32>
    %cst_26 = arith.constant dense<0.000000e+00> : vector<8x128xf32>
    %64 = tpu.matmul %57, %7, %cst_26 {dimension_numbers = #tpu.dot_dimension_numbers<[1], [0], [0], [1], [0, 0, 1, 1], [], []>} : vector<8x32xf32>, vector<32x128xf32>, vector<8x128xf32> -> vector<8x128xf32>
    %65 = arith.addf %63, %64 : vector<8x128xf32>
    %cst_27 = arith.constant 5.000000e-01 : f32
    %66 = vector.broadcast %cst_27 : f32 to vector<8x128xf32>
    %67 = arith.mulf %66, %65 : vector<8x128xf32>
    %68 = math.tanh %67 : vector<8x128xf32>
    %cst_28 = arith.constant 5.000000e-01 : f32
    %69 = vector.broadcast %cst_28 : f32 to vector<8x128xf32>
    %70 = arith.mulf %69, %68 : vector<8x128xf32>
    %cst_29 = arith.constant 5.000000e-01 : f32
    %71 = vector.broadcast %cst_29 : f32 to vector<8x128xf32>
    %72 = arith.addf %70, %71 : vector<8x128xf32>
    %73 = math.tanh %65 : vector<8x128xf32>
    %74 = vector.extract_strided_slice %72 {offsets = [0, 0], sizes = [8, 32], strides = [1, 1]} : vector<8x128xf32> to vector<8x32xf32>
    %75 = vector.extract_strided_slice %72 {offsets = [0, 32], sizes = [8, 32], strides = [1, 1]} : vector<8x128xf32> to vector<8x32xf32>
    %76 = vector.extract_strided_slice %73 {offsets = [0, 64], sizes = [8, 32], strides = [1, 1]} : vector<8x128xf32> to vector<8x32xf32>
    %77 = vector.extract_strided_slice %72 {offsets = [0, 96], sizes = [8, 32], strides = [1, 1]} : vector<8x128xf32> to vector<8x32xf32>
    %78 = arith.mulf %75, %55 : vector<8x32xf32>
    %79 = arith.mulf %74, %76 : vector<8x32xf32>
    %80 = arith.addf %78, %79 : vector<8x32xf32>
    %81 = math.tanh %80 : vector<8x32xf32>
    %82 = arith.mulf %77, %81 : vector<8x32xf32>
    %83 = arith.index_cast %61 : i32 to index
    %c0_30 = arith.constant 0 : index
    %84 = vector.load %arg11[%83, %c0_30] : memref<64x32xf32, #tpu.memory_space<vmem>>, vector<8x32xf32>
    tpu.vector_store %arg11[%83, %c0_30], %82 {strides = array<i32>} : memref<64x32xf32, #tpu.memory_space<vmem>>, vector<8x32xf32>,
    %c3_i32 = arith.constant 3 : i32
    %c8_i32_31 = arith.constant 8 : i32
    %85 = arith.muli %c3_i32, %c8_i32_31 : i32
    %86 = tpu.assume_multiple %85, 8 : i32
    %87 = arith.index_cast %86 : i32 to index
    %c0_32 = arith.constant 0 : index
    %88 = vector.load %arg10[%87, %c0_32] : memref<64x128xf32, #tpu.memory_space<vmem>>, vector<8x128xf32>
    %cst_33 = arith.constant dense<0.000000e+00> : vector<8x128xf32>
    %89 = tpu.matmul %82, %7, %cst_33 {dimension_numbers = #tpu.dot_dimension_numbers<[1], [0], [0], [1], [0, 0, 1, 1], [], []>} : vector<8x32xf32>, vector<32x128xf32>, vector<8x128xf32> -> vector<8x128xf32>
    %90 = arith.addf %88, %89 : vector<8x128xf32>
    %cst_34 = arith.constant 5.000000e-01 : f32
    %91 = vector.broadcast %cst_34 : f32 to vector<8x128xf32>
    %92 = arith.mulf %91, %90 : vector<8x128xf32>
    %93 = math.tanh %92 : vector<8x128xf32>
    %cst_35 = arith.constant 5.000000e-01 : f32
    %94 = vector.broadcast %cst_35 : f32 to vector<8x128xf32>
    %95 = arith.mulf %94, %93 : vector<8x128xf32>
    %cst_36 = arith.constant 5.000000e-01 : f32
    %96 = vector.broadcast %cst_36 : f32 to vector<8x128xf32>
    %97 = arith.addf %95, %96 : vector<8x128xf32>
    %98 = math.tanh %90 : vector<8x128xf32>
    %99 = vector.extract_strided_slice %97 {offsets = [0, 0], sizes = [8, 32], strides = [1, 1]} : vector<8x128xf32> to vector<8x32xf32>
    %100 = vector.extract_strided_slice %97 {offsets = [0, 32], sizes = [8, 32], strides = [1, 1]} : vector<8x128xf32> to vector<8x32xf32>
    %101 = vector.extract_strided_slice %98 {offsets = [0, 64], sizes = [8, 32], strides = [1, 1]} : vector<8x128xf32> to vector<8x32xf32>
    %102 = vector.extract_strided_slice %97 {offsets = [0, 96], sizes = [8, 32], strides = [1, 1]} : vector<8x128xf32> to vector<8x32xf32>
    %103 = arith.mulf %100, %80 : vector<8x32xf32>
    %104 = arith.mulf %99, %101 : vector<8x32xf32>
    %105 = arith.addf %103, %104 : vector<8x32xf32>
    %106 = math.tanh %105 : vector<8x32xf32>
    %107 = arith.mulf %102, %106 : vector<8x32xf32>
    %108 = arith.index_cast %86 : i32 to index
    %c0_37 = arith.constant 0 : index
    %109 = vector.load %arg11[%108, %c0_37] : memref<64x32xf32, #tpu.memory_space<vmem>>, vector<8x32xf32>
    tpu.vector_store %arg11[%108, %c0_37], %107 {strides = array<i32>} : memref<64x32xf32, #tpu.memory_space<vmem>>, vector<8x32xf32>,
    %c4_i32 = arith.constant 4 : i32
    %c8_i32_38 = arith.constant 8 : i32
    %110 = arith.muli %c4_i32, %c8_i32_38 : i32
    %111 = tpu.assume_multiple %110, 8 : i32
    %112 = arith.index_cast %111 : i32 to index
    %c0_39 = arith.constant 0 : index
    %113 = vector.load %arg10[%112, %c0_39] : memref<64x128xf32, #tpu.memory_space<vmem>>, vector<8x128xf32>
    %cst_40 = arith.constant dense<0.000000e+00> : vector<8x128xf32>
    %114 = tpu.matmul %107, %7, %cst_40 {dimension_numbers = #tpu.dot_dimension_numbers<[1], [0], [0], [1], [0, 0, 1, 1], [], []>} : vector<8x32xf32>, vector<32x128xf32>, vector<8x128xf32> -> vector<8x128xf32>
    %115 = arith.addf %113, %114 : vector<8x128xf32>
    %cst_41 = arith.constant 5.000000e-01 : f32
    %116 = vector.broadcast %cst_41 : f32 to vector<8x128xf32>
    %117 = arith.mulf %116, %115 : vector<8x128xf32>
    %118 = math.tanh %117 : vector<8x128xf32>
    %cst_42 = arith.constant 5.000000e-01 : f32
    %119 = vector.broadcast %cst_42 : f32 to vector<8x128xf32>
    %120 = arith.mulf %119, %118 : vector<8x128xf32>
    %cst_43 = arith.constant 5.000000e-01 : f32
    %121 = vector.broadcast %cst_43 : f32 to vector<8x128xf32>
    %122 = arith.addf %120, %121 : vector<8x128xf32>
    %123 = math.tanh %115 : vector<8x128xf32>
    %124 = vector.extract_strided_slice %122 {offsets = [0, 0], sizes = [8, 32], strides = [1, 1]} : vector<8x128xf32> to vector<8x32xf32>
    %125 = vector.extract_strided_slice %122 {offsets = [0, 32], sizes = [8, 32], strides = [1, 1]} : vector<8x128xf32> to vector<8x32xf32>
    %126 = vector.extract_strided_slice %123 {offsets = [0, 64], sizes = [8, 32], strides = [1, 1]} : vector<8x128xf32> to vector<8x32xf32>
    %127 = vector.extract_strided_slice %122 {offsets = [0, 96], sizes = [8, 32], strides = [1, 1]} : vector<8x128xf32> to vector<8x32xf32>
    %128 = arith.mulf %125, %105 : vector<8x32xf32>
    %129 = arith.mulf %124, %126 : vector<8x32xf32>
    %130 = arith.addf %128, %129 : vector<8x32xf32>
    %131 = math.tanh %130 : vector<8x32xf32>
    %132 = arith.mulf %127, %131 : vector<8x32xf32>
    %133 = arith.index_cast %111 : i32 to index
    %c0_44 = arith.constant 0 : index
    %134 = vector.load %arg11[%133, %c0_44] : memref<64x32xf32, #tpu.memory_space<vmem>>, vector<8x32xf32>
    tpu.vector_store %arg11[%133, %c0_44], %132 {strides = array<i32>} : memref<64x32xf32, #tpu.memory_space<vmem>>, vector<8x32xf32>,
    %c5_i32 = arith.constant 5 : i32
    %c8_i32_45 = arith.constant 8 : i32
    %135 = arith.muli %c5_i32, %c8_i32_45 : i32
    %136 = tpu.assume_multiple %135, 8 : i32
    %137 = arith.index_cast %136 : i32 to index
    %c0_46 = arith.constant 0 : index
    %138 = vector.load %arg10[%137, %c0_46] : memref<64x128xf32, #tpu.memory_space<vmem>>, vector<8x128xf32>
    %cst_47 = arith.constant dense<0.000000e+00> : vector<8x128xf32>
    %139 = tpu.matmul %132, %7, %cst_47 {dimension_numbers = #tpu.dot_dimension_numbers<[1], [0], [0], [1], [0, 0, 1, 1], [], []>} : vector<8x32xf32>, vector<32x128xf32>, vector<8x128xf32> -> vector<8x128xf32>
    %140 = arith.addf %138, %139 : vector<8x128xf32>
    %cst_48 = arith.constant 5.000000e-01 : f32
    %141 = vector.broadcast %cst_48 : f32 to vector<8x128xf32>
    %142 = arith.mulf %141, %140 : vector<8x128xf32>
    %143 = math.tanh %142 : vector<8x128xf32>
    %cst_49 = arith.constant 5.000000e-01 : f32
    %144 = vector.broadcast %cst_49 : f32 to vector<8x128xf32>
    %145 = arith.mulf %144, %143 : vector<8x128xf32>
    %cst_50 = arith.constant 5.000000e-01 : f32
    %146 = vector.broadcast %cst_50 : f32 to vector<8x128xf32>
    %147 = arith.addf %145, %146 : vector<8x128xf32>
    %148 = math.tanh %140 : vector<8x128xf32>
    %149 = vector.extract_strided_slice %147 {offsets = [0, 0], sizes = [8, 32], strides = [1, 1]} : vector<8x128xf32> to vector<8x32xf32>
    %150 = vector.extract_strided_slice %147 {offsets = [0, 32], sizes = [8, 32], strides = [1, 1]} : vector<8x128xf32> to vector<8x32xf32>
    %151 = vector.extract_strided_slice %148 {offsets = [0, 64], sizes = [8, 32], strides = [1, 1]} : vector<8x128xf32> to vector<8x32xf32>
    %152 = vector.extract_strided_slice %147 {offsets = [0, 96], sizes = [8, 32], strides = [1, 1]} : vector<8x128xf32> to vector<8x32xf32>
    %153 = arith.mulf %150, %130 : vector<8x32xf32>
    %154 = arith.mulf %149, %151 : vector<8x32xf32>
    %155 = arith.addf %153, %154 : vector<8x32xf32>
    %156 = math.tanh %155 : vector<8x32xf32>
    %157 = arith.mulf %152, %156 : vector<8x32xf32>
    %158 = arith.index_cast %136 : i32 to index
    %c0_51 = arith.constant 0 : index
    %159 = vector.load %arg11[%158, %c0_51] : memref<64x32xf32, #tpu.memory_space<vmem>>, vector<8x32xf32>
    tpu.vector_store %arg11[%158, %c0_51], %157 {strides = array<i32>} : memref<64x32xf32, #tpu.memory_space<vmem>>, vector<8x32xf32>,
    %c6_i32 = arith.constant 6 : i32
    %c8_i32_52 = arith.constant 8 : i32
    %160 = arith.muli %c6_i32, %c8_i32_52 : i32
    %161 = tpu.assume_multiple %160, 8 : i32
    %162 = arith.index_cast %161 : i32 to index
    %c0_53 = arith.constant 0 : index
    %163 = vector.load %arg10[%162, %c0_53] : memref<64x128xf32, #tpu.memory_space<vmem>>, vector<8x128xf32>
    %cst_54 = arith.constant dense<0.000000e+00> : vector<8x128xf32>
    %164 = tpu.matmul %157, %7, %cst_54 {dimension_numbers = #tpu.dot_dimension_numbers<[1], [0], [0], [1], [0, 0, 1, 1], [], []>} : vector<8x32xf32>, vector<32x128xf32>, vector<8x128xf32> -> vector<8x128xf32>
    %165 = arith.addf %163, %164 : vector<8x128xf32>
    %cst_55 = arith.constant 5.000000e-01 : f32
    %166 = vector.broadcast %cst_55 : f32 to vector<8x128xf32>
    %167 = arith.mulf %166, %165 : vector<8x128xf32>
    %168 = math.tanh %167 : vector<8x128xf32>
    %cst_56 = arith.constant 5.000000e-01 : f32
    %169 = vector.broadcast %cst_56 : f32 to vector<8x128xf32>
    %170 = arith.mulf %169, %168 : vector<8x128xf32>
    %cst_57 = arith.constant 5.000000e-01 : f32
    %171 = vector.broadcast %cst_57 : f32 to vector<8x128xf32>
    %172 = arith.addf %170, %171 : vector<8x128xf32>
    %173 = math.tanh %165 : vector<8x128xf32>
    %174 = vector.extract_strided_slice %172 {offsets = [0, 0], sizes = [8, 32], strides = [1, 1]} : vector<8x128xf32> to vector<8x32xf32>
    %175 = vector.extract_strided_slice %172 {offsets = [0, 32], sizes = [8, 32], strides = [1, 1]} : vector<8x128xf32> to vector<8x32xf32>
    %176 = vector.extract_strided_slice %173 {offsets = [0, 64], sizes = [8, 32], strides = [1, 1]} : vector<8x128xf32> to vector<8x32xf32>
    %177 = vector.extract_strided_slice %172 {offsets = [0, 96], sizes = [8, 32], strides = [1, 1]} : vector<8x128xf32> to vector<8x32xf32>
    %178 = arith.mulf %175, %155 : vector<8x32xf32>
    %179 = arith.mulf %174, %176 : vector<8x32xf32>
    %180 = arith.addf %178, %179 : vector<8x32xf32>
    %181 = math.tanh %180 : vector<8x32xf32>
    %182 = arith.mulf %177, %181 : vector<8x32xf32>
    %183 = arith.index_cast %161 : i32 to index
    %c0_58 = arith.constant 0 : index
    %184 = vector.load %arg11[%183, %c0_58] : memref<64x32xf32, #tpu.memory_space<vmem>>, vector<8x32xf32>
    tpu.vector_store %arg11[%183, %c0_58], %182 {strides = array<i32>} : memref<64x32xf32, #tpu.memory_space<vmem>>, vector<8x32xf32>,
    %c7_i32 = arith.constant 7 : i32
    %c8_i32_59 = arith.constant 8 : i32
    %185 = arith.muli %c7_i32, %c8_i32_59 : i32
    %186 = tpu.assume_multiple %185, 8 : i32
    %187 = arith.index_cast %186 : i32 to index
    %c0_60 = arith.constant 0 : index
    %188 = vector.load %arg10[%187, %c0_60] : memref<64x128xf32, #tpu.memory_space<vmem>>, vector<8x128xf32>
    %cst_61 = arith.constant dense<0.000000e+00> : vector<8x128xf32>
    %189 = tpu.matmul %182, %7, %cst_61 {dimension_numbers = #tpu.dot_dimension_numbers<[1], [0], [0], [1], [0, 0, 1, 1], [], []>} : vector<8x32xf32>, vector<32x128xf32>, vector<8x128xf32> -> vector<8x128xf32>
    %190 = arith.addf %188, %189 : vector<8x128xf32>
    %cst_62 = arith.constant 5.000000e-01 : f32
    %191 = vector.broadcast %cst_62 : f32 to vector<8x128xf32>
    %192 = arith.mulf %191, %190 : vector<8x128xf32>
    %193 = math.tanh %192 : vector<8x128xf32>
    %cst_63 = arith.constant 5.000000e-01 : f32
    %194 = vector.broadcast %cst_63 : f32 to vector<8x128xf32>
    %195 = arith.mulf %194, %193 : vector<8x128xf32>
    %cst_64 = arith.constant 5.000000e-01 : f32
    %196 = vector.broadcast %cst_64 : f32 to vector<8x128xf32>
    %197 = arith.addf %195, %196 : vector<8x128xf32>
    %198 = math.tanh %190 : vector<8x128xf32>
    %199 = vector.extract_strided_slice %197 {offsets = [0, 0], sizes = [8, 32], strides = [1, 1]} : vector<8x128xf32> to vector<8x32xf32>
    %200 = vector.extract_strided_slice %197 {offsets = [0, 32], sizes = [8, 32], strides = [1, 1]} : vector<8x128xf32> to vector<8x32xf32>
    %201 = vector.extract_strided_slice %198 {offsets = [0, 64], sizes = [8, 32], strides = [1, 1]} : vector<8x128xf32> to vector<8x32xf32>
    %202 = vector.extract_strided_slice %197 {offsets = [0, 96], sizes = [8, 32], strides = [1, 1]} : vector<8x128xf32> to vector<8x32xf32>
    %203 = arith.mulf %200, %180 : vector<8x32xf32>
    %204 = arith.mulf %199, %201 : vector<8x32xf32>
    %205 = arith.addf %203, %204 : vector<8x32xf32>
    %206 = math.tanh %205 : vector<8x32xf32>
    %207 = arith.mulf %202, %206 : vector<8x32xf32>
    %208 = arith.index_cast %186 : i32 to index
    %c0_65 = arith.constant 0 : index
    %209 = vector.load %arg11[%208, %c0_65] : memref<64x32xf32, #tpu.memory_space<vmem>>, vector<8x32xf32>
    tpu.vector_store %arg11[%208, %c0_65], %207 {strides = array<i32>} : memref<64x32xf32, #tpu.memory_space<vmem>>, vector<8x32xf32>,
    %c8_i32_66 = arith.constant 8 : i32
    %c0_67 = arith.constant 0 : index
    %c0_68 = arith.constant 0 : index
    %210 = vector.load %arg11[%c0_67, %c0_68] : memref<64x32xf32, #tpu.memory_space<vmem>>, vector<64x32xf32>
    %c0_69 = arith.constant 0 : index
    %c0_70 = arith.constant 0 : index
    %211 = vector.load %arg4[%c0_69, %c0_70] : memref<32x128xf32, #tpu.memory_space<vmem>>, vector<32x128xf32>
    %cst_71 = arith.constant dense<0.000000e+00> : vector<64x128xf32>
    %212 = tpu.matmul %210, %211, %cst_71 {dimension_numbers = #tpu.dot_dimension_numbers<[1], [0], [0], [1], [0, 0, 1, 1], [], []>} : vector<64x32xf32>, vector<32x128xf32>, vector<64x128xf32> -> vector<64x128xf32>
    %c0_72 = arith.constant 0 : index
    %c0_73 = arith.constant 0 : index
    %213 = vector.load %arg6[%c0_72, %c0_73] : memref<1x128xf32, #tpu.memory_space<vmem>>, vector<1x128xf32>
    %214 = vector.broadcast %213 : vector<1x128xf32> to vector<64x128xf32>
    %215 = arith.addf %212, %214 : vector<64x128xf32>
    %c0_74 = arith.constant 0 : index
    %c0_75 = arith.constant 0 : index
    %216 = vector.load %arg10[%c0_74, %c0_75] : memref<64x128xf32, #tpu.memory_space<vmem>>, vector<64x128xf32>
    tpu.vector_store %arg10[%c0_74, %c0_75], %215 {strides = array<i32>} : memref<64x128xf32, #tpu.memory_space<vmem>>, vector<64x128xf32>,
    %c0_76 = arith.constant 0 : index
    %c0_77 = arith.constant 0 : index
    %217 = vector.load %arg5[%c0_76, %c0_77] : memref<32x128xf32, #tpu.memory_space<vmem>>, vector<32x128xf32>
    %cst_78 = arith.constant 0.000000e+00 : f32
    %218 = vector.broadcast %cst_78 : f32 to vector<8x32xf32>
    %cst_79 = arith.constant 0.000000e+00 : f32
    %219 = vector.broadcast %cst_79 : f32 to vector<8x32xf32>
    %c0_i32_80 = arith.constant 0 : i32
    %c8_i32_81 = arith.constant 8 : i32
    %220 = arith.muli %c0_i32_80, %c8_i32_81 : i32
    %221 = tpu.assume_multiple %220, 8 : i32
    %222 = arith.index_cast %221 : i32 to index
    %c0_82 = arith.constant 0 : index
    %223 = vector.load %arg10[%222, %c0_82] : memref<64x128xf32, #tpu.memory_space<vmem>>, vector<8x128xf32>
    %cst_83 = arith.constant dense<0.000000e+00> : vector<8x128xf32>
    %224 = tpu.matmul %218, %217, %cst_83 {dimension_numbers = #tpu.dot_dimension_numbers<[1], [0], [0], [1], [0, 0, 1, 1], [], []>} : vector<8x32xf32>, vector<32x128xf32>, vector<8x128xf32> -> vector<8x128xf32>
    %225 = arith.addf %223, %224 : vector<8x128xf32>
    %cst_84 = arith.constant 5.000000e-01 : f32
    %226 = vector.broadcast %cst_84 : f32 to vector<8x128xf32>
    %227 = arith.mulf %226, %225 : vector<8x128xf32>
    %228 = math.tanh %227 : vector<8x128xf32>
    %cst_85 = arith.constant 5.000000e-01 : f32
    %229 = vector.broadcast %cst_85 : f32 to vector<8x128xf32>
    %230 = arith.mulf %229, %228 : vector<8x128xf32>
    %cst_86 = arith.constant 5.000000e-01 : f32
    %231 = vector.broadcast %cst_86 : f32 to vector<8x128xf32>
    %232 = arith.addf %230, %231 : vector<8x128xf32>
    %233 = math.tanh %225 : vector<8x128xf32>
    %234 = vector.extract_strided_slice %232 {offsets = [0, 0], sizes = [8, 32], strides = [1, 1]} : vector<8x128xf32> to vector<8x32xf32>
    %235 = vector.extract_strided_slice %232 {offsets = [0, 32], sizes = [8, 32], strides = [1, 1]} : vector<8x128xf32> to vector<8x32xf32>
    %236 = vector.extract_strided_slice %233 {offsets = [0, 64], sizes = [8, 32], strides = [1, 1]} : vector<8x128xf32> to vector<8x32xf32>
    %237 = vector.extract_strided_slice %232 {offsets = [0, 96], sizes = [8, 32], strides = [1, 1]} : vector<8x128xf32> to vector<8x32xf32>
    %238 = arith.mulf %235, %219 : vector<8x32xf32>
    %239 = arith.mulf %234, %236 : vector<8x32xf32>
    %240 = arith.addf %238, %239 : vector<8x32xf32>
    %241 = math.tanh %240 : vector<8x32xf32>
    %242 = arith.mulf %237, %241 : vector<8x32xf32>
    %c1_i32_87 = arith.constant 1 : i32
    %c8_i32_88 = arith.constant 8 : i32
    %243 = arith.muli %c1_i32_87, %c8_i32_88 : i32
    %244 = tpu.assume_multiple %243, 8 : i32
    %245 = arith.index_cast %244 : i32 to index
    %c0_89 = arith.constant 0 : index
    %246 = vector.load %arg10[%245, %c0_89] : memref<64x128xf32, #tpu.memory_space<vmem>>, vector<8x128xf32>
    %cst_90 = arith.constant dense<0.000000e+00> : vector<8x128xf32>
    %247 = tpu.matmul %242, %217, %cst_90 {dimension_numbers = #tpu.dot_dimension_numbers<[1], [0], [0], [1], [0, 0, 1, 1], [], []>} : vector<8x32xf32>, vector<32x128xf32>, vector<8x128xf32> -> vector<8x128xf32>
    %248 = arith.addf %246, %247 : vector<8x128xf32>
    %cst_91 = arith.constant 5.000000e-01 : f32
    %249 = vector.broadcast %cst_91 : f32 to vector<8x128xf32>
    %250 = arith.mulf %249, %248 : vector<8x128xf32>
    %251 = math.tanh %250 : vector<8x128xf32>
    %cst_92 = arith.constant 5.000000e-01 : f32
    %252 = vector.broadcast %cst_92 : f32 to vector<8x128xf32>
    %253 = arith.mulf %252, %251 : vector<8x128xf32>
    %cst_93 = arith.constant 5.000000e-01 : f32
    %254 = vector.broadcast %cst_93 : f32 to vector<8x128xf32>
    %255 = arith.addf %253, %254 : vector<8x128xf32>
    %256 = math.tanh %248 : vector<8x128xf32>
    %257 = vector.extract_strided_slice %255 {offsets = [0, 0], sizes = [8, 32], strides = [1, 1]} : vector<8x128xf32> to vector<8x32xf32>
    %258 = vector.extract_strided_slice %255 {offsets = [0, 32], sizes = [8, 32], strides = [1, 1]} : vector<8x128xf32> to vector<8x32xf32>
    %259 = vector.extract_strided_slice %256 {offsets = [0, 64], sizes = [8, 32], strides = [1, 1]} : vector<8x128xf32> to vector<8x32xf32>
    %260 = vector.extract_strided_slice %255 {offsets = [0, 96], sizes = [8, 32], strides = [1, 1]} : vector<8x128xf32> to vector<8x32xf32>
    %261 = arith.mulf %258, %240 : vector<8x32xf32>
    %262 = arith.mulf %257, %259 : vector<8x32xf32>
    %263 = arith.addf %261, %262 : vector<8x32xf32>
    %264 = math.tanh %263 : vector<8x32xf32>
    %265 = arith.mulf %260, %264 : vector<8x32xf32>
    %c2_i32_94 = arith.constant 2 : i32
    %c8_i32_95 = arith.constant 8 : i32
    %266 = arith.muli %c2_i32_94, %c8_i32_95 : i32
    %267 = tpu.assume_multiple %266, 8 : i32
    %268 = arith.index_cast %267 : i32 to index
    %c0_96 = arith.constant 0 : index
    %269 = vector.load %arg10[%268, %c0_96] : memref<64x128xf32, #tpu.memory_space<vmem>>, vector<8x128xf32>
    %cst_97 = arith.constant dense<0.000000e+00> : vector<8x128xf32>
    %270 = tpu.matmul %265, %217, %cst_97 {dimension_numbers = #tpu.dot_dimension_numbers<[1], [0], [0], [1], [0, 0, 1, 1], [], []>} : vector<8x32xf32>, vector<32x128xf32>, vector<8x128xf32> -> vector<8x128xf32>
    %271 = arith.addf %269, %270 : vector<8x128xf32>
    %cst_98 = arith.constant 5.000000e-01 : f32
    %272 = vector.broadcast %cst_98 : f32 to vector<8x128xf32>
    %273 = arith.mulf %272, %271 : vector<8x128xf32>
    %274 = math.tanh %273 : vector<8x128xf32>
    %cst_99 = arith.constant 5.000000e-01 : f32
    %275 = vector.broadcast %cst_99 : f32 to vector<8x128xf32>
    %276 = arith.mulf %275, %274 : vector<8x128xf32>
    %cst_100 = arith.constant 5.000000e-01 : f32
    %277 = vector.broadcast %cst_100 : f32 to vector<8x128xf32>
    %278 = arith.addf %276, %277 : vector<8x128xf32>
    %279 = math.tanh %271 : vector<8x128xf32>
    %280 = vector.extract_strided_slice %278 {offsets = [0, 0], sizes = [8, 32], strides = [1, 1]} : vector<8x128xf32> to vector<8x32xf32>
    %281 = vector.extract_strided_slice %278 {offsets = [0, 32], sizes = [8, 32], strides = [1, 1]} : vector<8x128xf32> to vector<8x32xf32>
    %282 = vector.extract_strided_slice %279 {offsets = [0, 64], sizes = [8, 32], strides = [1, 1]} : vector<8x128xf32> to vector<8x32xf32>
    %283 = vector.extract_strided_slice %278 {offsets = [0, 96], sizes = [8, 32], strides = [1, 1]} : vector<8x128xf32> to vector<8x32xf32>
    %284 = arith.mulf %281, %263 : vector<8x32xf32>
    %285 = arith.mulf %280, %282 : vector<8x32xf32>
    %286 = arith.addf %284, %285 : vector<8x32xf32>
    %287 = math.tanh %286 : vector<8x32xf32>
    %288 = arith.mulf %283, %287 : vector<8x32xf32>
    %c3_i32_101 = arith.constant 3 : i32
    %c8_i32_102 = arith.constant 8 : i32
    %289 = arith.muli %c3_i32_101, %c8_i32_102 : i32
    %290 = tpu.assume_multiple %289, 8 : i32
    %291 = arith.index_cast %290 : i32 to index
    %c0_103 = arith.constant 0 : index
    %292 = vector.load %arg10[%291, %c0_103] : memref<64x128xf32, #tpu.memory_space<vmem>>, vector<8x128xf32>
    %cst_104 = arith.constant dense<0.000000e+00> : vector<8x128xf32>
    %293 = tpu.matmul %288, %217, %cst_104 {dimension_numbers = #tpu.dot_dimension_numbers<[1], [0], [0], [1], [0, 0, 1, 1], [], []>} : vector<8x32xf32>, vector<32x128xf32>, vector<8x128xf32> -> vector<8x128xf32>
    %294 = arith.addf %292, %293 : vector<8x128xf32>
    %cst_105 = arith.constant 5.000000e-01 : f32
    %295 = vector.broadcast %cst_105 : f32 to vector<8x128xf32>
    %296 = arith.mulf %295, %294 : vector<8x128xf32>
    %297 = math.tanh %296 : vector<8x128xf32>
    %cst_106 = arith.constant 5.000000e-01 : f32
    %298 = vector.broadcast %cst_106 : f32 to vector<8x128xf32>
    %299 = arith.mulf %298, %297 : vector<8x128xf32>
    %cst_107 = arith.constant 5.000000e-01 : f32
    %300 = vector.broadcast %cst_107 : f32 to vector<8x128xf32>
    %301 = arith.addf %299, %300 : vector<8x128xf32>
    %302 = math.tanh %294 : vector<8x128xf32>
    %303 = vector.extract_strided_slice %301 {offsets = [0, 0], sizes = [8, 32], strides = [1, 1]} : vector<8x128xf32> to vector<8x32xf32>
    %304 = vector.extract_strided_slice %301 {offsets = [0, 32], sizes = [8, 32], strides = [1, 1]} : vector<8x128xf32> to vector<8x32xf32>
    %305 = vector.extract_strided_slice %302 {offsets = [0, 64], sizes = [8, 32], strides = [1, 1]} : vector<8x128xf32> to vector<8x32xf32>
    %306 = vector.extract_strided_slice %301 {offsets = [0, 96], sizes = [8, 32], strides = [1, 1]} : vector<8x128xf32> to vector<8x32xf32>
    %307 = arith.mulf %304, %286 : vector<8x32xf32>
    %308 = arith.mulf %303, %305 : vector<8x32xf32>
    %309 = arith.addf %307, %308 : vector<8x32xf32>
    %310 = math.tanh %309 : vector<8x32xf32>
    %311 = arith.mulf %306, %310 : vector<8x32xf32>
    %c4_i32_108 = arith.constant 4 : i32
    %c8_i32_109 = arith.constant 8 : i32
    %312 = arith.muli %c4_i32_108, %c8_i32_109 : i32
    %313 = tpu.assume_multiple %312, 8 : i32
    %314 = arith.index_cast %313 : i32 to index
    %c0_110 = arith.constant 0 : index
    %315 = vector.load %arg10[%314, %c0_110] : memref<64x128xf32, #tpu.memory_space<vmem>>, vector<8x128xf32>
    %cst_111 = arith.constant dense<0.000000e+00> : vector<8x128xf32>
    %316 = tpu.matmul %311, %217, %cst_111 {dimension_numbers = #tpu.dot_dimension_numbers<[1], [0], [0], [1], [0, 0, 1, 1], [], []>} : vector<8x32xf32>, vector<32x128xf32>, vector<8x128xf32> -> vector<8x128xf32>
    %317 = arith.addf %315, %316 : vector<8x128xf32>
    %cst_112 = arith.constant 5.000000e-01 : f32
    %318 = vector.broadcast %cst_112 : f32 to vector<8x128xf32>
    %319 = arith.mulf %318, %317 : vector<8x128xf32>
    %320 = math.tanh %319 : vector<8x128xf32>
    %cst_113 = arith.constant 5.000000e-01 : f32
    %321 = vector.broadcast %cst_113 : f32 to vector<8x128xf32>
    %322 = arith.mulf %321, %320 : vector<8x128xf32>
    %cst_114 = arith.constant 5.000000e-01 : f32
    %323 = vector.broadcast %cst_114 : f32 to vector<8x128xf32>
    %324 = arith.addf %322, %323 : vector<8x128xf32>
    %325 = math.tanh %317 : vector<8x128xf32>
    %326 = vector.extract_strided_slice %324 {offsets = [0, 0], sizes = [8, 32], strides = [1, 1]} : vector<8x128xf32> to vector<8x32xf32>
    %327 = vector.extract_strided_slice %324 {offsets = [0, 32], sizes = [8, 32], strides = [1, 1]} : vector<8x128xf32> to vector<8x32xf32>
    %328 = vector.extract_strided_slice %325 {offsets = [0, 64], sizes = [8, 32], strides = [1, 1]} : vector<8x128xf32> to vector<8x32xf32>
    %329 = vector.extract_strided_slice %324 {offsets = [0, 96], sizes = [8, 32], strides = [1, 1]} : vector<8x128xf32> to vector<8x32xf32>
    %330 = arith.mulf %327, %309 : vector<8x32xf32>
    %331 = arith.mulf %326, %328 : vector<8x32xf32>
    %332 = arith.addf %330, %331 : vector<8x32xf32>
    %333 = math.tanh %332 : vector<8x32xf32>
    %334 = arith.mulf %329, %333 : vector<8x32xf32>
    %c5_i32_115 = arith.constant 5 : i32
    %c8_i32_116 = arith.constant 8 : i32
    %335 = arith.muli %c5_i32_115, %c8_i32_116 : i32
    %336 = tpu.assume_multiple %335, 8 : i32
    %337 = arith.index_cast %336 : i32 to index
    %c0_117 = arith.constant 0 : index
    %338 = vector.load %arg10[%337, %c0_117] : memref<64x128xf32, #tpu.memory_space<vmem>>, vector<8x128xf32>
    %cst_118 = arith.constant dense<0.000000e+00> : vector<8x128xf32>
    %339 = tpu.matmul %334, %217, %cst_118 {dimension_numbers = #tpu.dot_dimension_numbers<[1], [0], [0], [1], [0, 0, 1, 1], [], []>} : vector<8x32xf32>, vector<32x128xf32>, vector<8x128xf32> -> vector<8x128xf32>
    %340 = arith.addf %338, %339 : vector<8x128xf32>
    %cst_119 = arith.constant 5.000000e-01 : f32
    %341 = vector.broadcast %cst_119 : f32 to vector<8x128xf32>
    %342 = arith.mulf %341, %340 : vector<8x128xf32>
    %343 = math.tanh %342 : vector<8x128xf32>
    %cst_120 = arith.constant 5.000000e-01 : f32
    %344 = vector.broadcast %cst_120 : f32 to vector<8x128xf32>
    %345 = arith.mulf %344, %343 : vector<8x128xf32>
    %cst_121 = arith.constant 5.000000e-01 : f32
    %346 = vector.broadcast %cst_121 : f32 to vector<8x128xf32>
    %347 = arith.addf %345, %346 : vector<8x128xf32>
    %348 = math.tanh %340 : vector<8x128xf32>
    %349 = vector.extract_strided_slice %347 {offsets = [0, 0], sizes = [8, 32], strides = [1, 1]} : vector<8x128xf32> to vector<8x32xf32>
    %350 = vector.extract_strided_slice %347 {offsets = [0, 32], sizes = [8, 32], strides = [1, 1]} : vector<8x128xf32> to vector<8x32xf32>
    %351 = vector.extract_strided_slice %348 {offsets = [0, 64], sizes = [8, 32], strides = [1, 1]} : vector<8x128xf32> to vector<8x32xf32>
    %352 = vector.extract_strided_slice %347 {offsets = [0, 96], sizes = [8, 32], strides = [1, 1]} : vector<8x128xf32> to vector<8x32xf32>
    %353 = arith.mulf %350, %332 : vector<8x32xf32>
    %354 = arith.mulf %349, %351 : vector<8x32xf32>
    %355 = arith.addf %353, %354 : vector<8x32xf32>
    %356 = math.tanh %355 : vector<8x32xf32>
    %357 = arith.mulf %352, %356 : vector<8x32xf32>
    %c6_i32_122 = arith.constant 6 : i32
    %c8_i32_123 = arith.constant 8 : i32
    %358 = arith.muli %c6_i32_122, %c8_i32_123 : i32
    %359 = tpu.assume_multiple %358, 8 : i32
    %360 = arith.index_cast %359 : i32 to index
    %c0_124 = arith.constant 0 : index
    %361 = vector.load %arg10[%360, %c0_124] : memref<64x128xf32, #tpu.memory_space<vmem>>, vector<8x128xf32>
    %cst_125 = arith.constant dense<0.000000e+00> : vector<8x128xf32>
    %362 = tpu.matmul %357, %217, %cst_125 {dimension_numbers = #tpu.dot_dimension_numbers<[1], [0], [0], [1], [0, 0, 1, 1], [], []>} : vector<8x32xf32>, vector<32x128xf32>, vector<8x128xf32> -> vector<8x128xf32>
    %363 = arith.addf %361, %362 : vector<8x128xf32>
    %cst_126 = arith.constant 5.000000e-01 : f32
    %364 = vector.broadcast %cst_126 : f32 to vector<8x128xf32>
    %365 = arith.mulf %364, %363 : vector<8x128xf32>
    %366 = math.tanh %365 : vector<8x128xf32>
    %cst_127 = arith.constant 5.000000e-01 : f32
    %367 = vector.broadcast %cst_127 : f32 to vector<8x128xf32>
    %368 = arith.mulf %367, %366 : vector<8x128xf32>
    %cst_128 = arith.constant 5.000000e-01 : f32
    %369 = vector.broadcast %cst_128 : f32 to vector<8x128xf32>
    %370 = arith.addf %368, %369 : vector<8x128xf32>
    %371 = math.tanh %363 : vector<8x128xf32>
    %372 = vector.extract_strided_slice %370 {offsets = [0, 0], sizes = [8, 32], strides = [1, 1]} : vector<8x128xf32> to vector<8x32xf32>
    %373 = vector.extract_strided_slice %370 {offsets = [0, 32], sizes = [8, 32], strides = [1, 1]} : vector<8x128xf32> to vector<8x32xf32>
    %374 = vector.extract_strided_slice %371 {offsets = [0, 64], sizes = [8, 32], strides = [1, 1]} : vector<8x128xf32> to vector<8x32xf32>
    %375 = vector.extract_strided_slice %370 {offsets = [0, 96], sizes = [8, 32], strides = [1, 1]} : vector<8x128xf32> to vector<8x32xf32>
    %376 = arith.mulf %373, %355 : vector<8x32xf32>
    %377 = arith.mulf %372, %374 : vector<8x32xf32>
    %378 = arith.addf %376, %377 : vector<8x32xf32>
    %379 = math.tanh %378 : vector<8x32xf32>
    %380 = arith.mulf %375, %379 : vector<8x32xf32>
    %c7_i32_129 = arith.constant 7 : i32
    %c8_i32_130 = arith.constant 8 : i32
    %381 = arith.muli %c7_i32_129, %c8_i32_130 : i32
    %382 = tpu.assume_multiple %381, 8 : i32
    %383 = arith.index_cast %382 : i32 to index
    %c0_131 = arith.constant 0 : index
    %384 = vector.load %arg10[%383, %c0_131] : memref<64x128xf32, #tpu.memory_space<vmem>>, vector<8x128xf32>
    %cst_132 = arith.constant dense<0.000000e+00> : vector<8x128xf32>
    %385 = tpu.matmul %380, %217, %cst_132 {dimension_numbers = #tpu.dot_dimension_numbers<[1], [0], [0], [1], [0, 0, 1, 1], [], []>} : vector<8x32xf32>, vector<32x128xf32>, vector<8x128xf32> -> vector<8x128xf32>
    %386 = arith.addf %384, %385 : vector<8x128xf32>
    %cst_133 = arith.constant 5.000000e-01 : f32
    %387 = vector.broadcast %cst_133 : f32 to vector<8x128xf32>
    %388 = arith.mulf %387, %386 : vector<8x128xf32>
    %389 = math.tanh %388 : vector<8x128xf32>
    %cst_134 = arith.constant 5.000000e-01 : f32
    %390 = vector.broadcast %cst_134 : f32 to vector<8x128xf32>
    %391 = arith.mulf %390, %389 : vector<8x128xf32>
    %cst_135 = arith.constant 5.000000e-01 : f32
    %392 = vector.broadcast %cst_135 : f32 to vector<8x128xf32>
    %393 = arith.addf %391, %392 : vector<8x128xf32>
    %394 = math.tanh %386 : vector<8x128xf32>
    %395 = vector.extract_strided_slice %393 {offsets = [0, 0], sizes = [8, 32], strides = [1, 1]} : vector<8x128xf32> to vector<8x32xf32>
    %396 = vector.extract_strided_slice %393 {offsets = [0, 32], sizes = [8, 32], strides = [1, 1]} : vector<8x128xf32> to vector<8x32xf32>
    %397 = vector.extract_strided_slice %394 {offsets = [0, 64], sizes = [8, 32], strides = [1, 1]} : vector<8x128xf32> to vector<8x32xf32>
    %398 = vector.extract_strided_slice %393 {offsets = [0, 96], sizes = [8, 32], strides = [1, 1]} : vector<8x128xf32> to vector<8x32xf32>
    %399 = arith.mulf %396, %378 : vector<8x32xf32>
    %400 = arith.mulf %395, %397 : vector<8x32xf32>
    %401 = arith.addf %399, %400 : vector<8x32xf32>
    %402 = math.tanh %401 : vector<8x32xf32>
    %403 = arith.mulf %398, %402 : vector<8x32xf32>
    %c8_i32_136 = arith.constant 8 : i32
    %c0_137 = arith.constant 0 : index
    %c0_138 = arith.constant 0 : index
    %404 = vector.load %arg7[%c0_137, %c0_138] : memref<32x128xf32, #tpu.memory_space<vmem>>, vector<32x128xf32>
    %cst_139 = arith.constant dense<0.000000e+00> : vector<8x128xf32>
    %405 = tpu.matmul %403, %404, %cst_139 {dimension_numbers = #tpu.dot_dimension_numbers<[1], [0], [0], [1], [0, 0, 1, 1], [], []>} : vector<8x32xf32>, vector<32x128xf32>, vector<8x128xf32> -> vector<8x128xf32>
    %c0_140 = arith.constant 0 : index
    %c0_141 = arith.constant 0 : index
    %406 = vector.load %arg8[%c0_140, %c0_141] : memref<1x128xf32, #tpu.memory_space<vmem>>, vector<1x128xf32>
    %407 = vector.broadcast %406 : vector<1x128xf32> to vector<8x128xf32>
    %408 = arith.addf %405, %407 : vector<8x128xf32>
    %c0_142 = arith.constant 0 : index
    %c0_143 = arith.constant 0 : index
    %409 = vector.load %arg9[%c0_142, %c0_143] : memref<8x128xf32, #tpu.memory_space<vmem>>, vector<8x128xf32>
    tpu.vector_store %arg9[%c0_142, %c0_143], %408 {strides = array<i32>} : memref<8x128xf32, #tpu.memory_space<vmem>>, vector<8x128xf32>,
    return
  }
}

</mosaic_0001>

<bundles_post_ra>
// kernel: tpu_custom_call.1
= control target key start
LH: loop header
LB: loop body
LE: loop exit
PB: predicated region body
PF: predicated region fallthrough
CT: control target
= control target key end

     0   :  { %14 = vsyncpa [#allocation5], 0  ;;  %s3185_s0 = inlined_call_operand.vmem [shape: f32[64,16], index: 0, kind: input, shape index: {}]   ;;  %s3186_s1 = inlined_call_operand.hbm [shape: f32[16,128], index: 1, kind: input, shape index: {}]   ;;  %s3187_s2 = inlined_call_operand.vmem [shape: f32[32,128], index: 2, kind: input, shape index: {}]   ;;  %s3188_s3 = inlined_call_operand.vmem [shape: f32[1,128], index: 3, kind: input, shape index: {}]   ;;  %s3189_s4 = inlined_call_operand.vmem [shape: f32[32,128], index: 4, kind: input, shape index: {}]   ;;  %s3190_s5 = inlined_call_operand.vmem [shape: f32[32,128], index: 5, kind: input, shape index: {}]   ;;  %s3191_s6 = inlined_call_operand.vmem [shape: f32[1,128], index: 6, kind: input, shape index: {}]   ;;  %s3192_s7 = inlined_call_operand.hbm [shape: f32[32,128], index: 7, kind: input, shape index: {}]   ;;  %s3193_s8 = inlined_call_operand.vmem [shape: f32[1,128], index: 8, kind: input, shape index: {}]   ;;  %s3194_s9 = inlined_call_operand.hbm [shape: f32[8,128], index: 9, kind: output, shape index: {}]  }
   0x1   :  { %15 = vsyncpa [#allocation8], 0 }
   0x2   :  { %16 = vsyncpa [#allocation6], 0  ;;  %s2750_s30 = smov [#allocation4]   ;;  %s2678_s13 = scalar_lea.hbm %s3186_s1, 256 }
   0x3   :  { %s24_s10 = sshll.u32 %s2750_s30, 4  ;;  %p2679_p0 = scmp.ne.s32.totalorder %s3186_s1, %s2678_s13  ;;  %s25_s10 = int_to_ptr.vmem [resolvable:$true] %s24_s10 }
   0x4   :  { %p2682_p1 = scmp.lt.u32.totalorder %s2678_s13, %s3186_s1 }
   0x6   :  { %p2684_p2 = pnand %p2682_p1, %p2679_p0 }
   0x8   :  { %2687 = shalt.err (!%p2684_p2)
}
   0x9   :  { %s2688_s18 = scalar_lea.vmem %s25_s10, 256  ;;  %p2693_p4 = scmp.lt.s32.totalorder %s25_s10, %s25_s10 }
   0xa   :  { %p2689_p3 = scmp.ne.s32.totalorder %s25_s10, %s2688_s18  ;;  %p2694_p5 = scmp.lt.s32.totalorder %s2688_s18, %s2688_s18 }
   0xc   :  { %p2695_p6 = por %p2694_p5, %p2693_p4 }
   0xe   :  { %p2696_p7 = pnand %p2695_p6, %p2689_p3 }
  0x10   :  { %2699 = shalt.err (!%p2696_p7)
}
  0x11   :  { %s2751_s19 = smov 128   ;;  %s2752_s20 = smov 8  }
  0x12   :  { %30 = dma.hbm_to_vmem [thread:$0]  %s3186_s1, 256, %s25_s10, [#allocation5], %s2751_s19, %s2751_s19, %s2752_s20  }
  0x13   :  { %s2753_s23 = smov [#allocation7]   ;;  %s2700_s27 = scalar_lea.hbm %s3192_s7, 512 }
  0x14   :  { %s46_s24 = sshll.u32 %s2753_s23, 4  ;;  %p2701_p8 = scmp.ne.s32.totalorder %s3192_s7, %s2700_s27  ;;  %s47_s24 = int_to_ptr.vmem [resolvable:$true] %s46_s24 }
  0x15   :  { %p2704_p9 = scmp.lt.u32.totalorder %s2700_s27, %s3192_s7 }
  0x17   :  { %p2706_p10 = pnand %p2704_p9, %p2701_p8 }
  0x19   :  { %2709 = shalt.err (!%p2706_p10)
}
  0x1a   :  { %s2710_s12 = scalar_lea.vmem %s47_s24, 512  ;;  %p2715_p12 = scmp.lt.s32.totalorder %s47_s24, %s47_s24 }
  0x1b   :  { %p2711_p11 = scmp.ne.s32.totalorder %s47_s24, %s2710_s12  ;;  %p2716_p13 = scmp.lt.s32.totalorder %s2710_s12, %s2710_s12 }
  0x1d   :  { %p2717_p0 = por %p2716_p13, %p2715_p12 }
  0x1f   :  { %p2718_p1 = pnand %p2717_p0, %p2711_p11 }
  0x21   :  { %2721 = shalt.err (!%p2718_p1)
}
  0x22   :  { %52 = dma.hbm_to_vmem [thread:$0]  %s3192_s7, 512, %s47_s24, [#allocation8], %s2751_s19, %s2751_s19, %s2752_s20  }
  0x23   :  { %2744 = dma.done.wait [#allocation5], 256  }
  0x24   :  { %2745 = vsyncadd [#allocation5], 4294967040 }
  0x25   :  { %2746 = dma.done.wait [#allocation8], 512  }
  0x26   :  { %2747 = vsyncadd [#allocation8], 4294966784  ;;  %v2754_v0 = vmov 0.0|0.0   ;;  %vm2755_vm0 = vmmov 0   ;;  %v2756_v1 = vmov 0.0   ;;  %vm78_vm1 = vcmask 130048  }
  0x27   :  { %2462 = vmatprep.subr.bf16.mxu1 %v2754_v0  ;;  %2259 = vmatprep.mubr.msk.f32.mxu1 %vm2755_vm0, %v2756_v1  ;;  %v69_v2 = vld [vmem:[#allocation4] sm:$0xff]  ;;  %v70_v3 = vld [vmem:[#allocation4 + $0x8] sm:$0xff]  ;;  %v218_v9 = vld [vmem:[%s3187_s2 + $0x10] sm:$0xff]  ;;  %s2757_s25 = smov 64   ;;  %vm221_vm2 = vcmask 261120   ;;  %s2759_s11 = smov [#allocation9]  }
  0x28   :  { %v216_v4 = vld [vmem:[%s3187_s2] sm:$0xff]  ;;  %v2458_v5 = vpack.c.bf16 %v70_v3, %v69_v2  ;;  %v217_v6 = vld [vmem:[%s3187_s2 + $0x8] sm:$0xff]  ;;  %v219_v10 = vld [vmem:[%s3187_s2 + $0x18] sm:$0xff]  ;;  %s2084_s12 = sshll.u32 %s2759_s11, 4  ;;  %s2085_s12 = int_to_ptr.vmem [resolvable:$true] %s2084_s12 }
  0x29   :  { %v61_v7 = vld [vmem:[%s3185_s0] sm:$0xff]  ;;  %v2846_v8 = vpack.c.bf16 %v217_v6, %v216_v4  ;;  %v62_v11 = vld [vmem:[%s3185_s0 + $0x8] sm:$0xff]  ;;  %v2859_v12 = vpack.c.bf16 %v219_v10, %v218_v9  ;;  %v63_v48 = vld [vmem:[%s3185_s0 + $0x10] sm:$0xff]  ;;  %s2722_s1 = scalar_lea.vmem %s2085_s12, 128  ;;  %p2727_p3 = scmp.lt.s32.totalorder %s2085_s12, %s2085_s12 }
  0x2a   :  { %2239 = vmatprep.mubr.msk.f32.mxu0 %vm78_vm1, %v61_v7  ;;  %2459 = vmatprep.subr.bf16.mxu0 %v2458_v5  ;;  %v2880_v13 = vld [vmem:[%s3188_s3] ss:$0 sm:$0xff]  ;;  %s2758_s3 = smov 32   ;;  %v64_v49 = vld [vmem:[%s3185_s0 + $0x18] sm:$0xff]  ;;  %v66_v51 = vld [vmem:[%s3185_s0 + $0x28] sm:$0xff]  ;;  %p2723_p2 = scmp.ne.s32.totalorder %s2085_s12, %s2722_s1 }
  0x2b   :  { %2464 = vmatpush3.bf16.msra.mxu1 %v2846_v8  ;;  %2461 = vmatpush3.bf16.msra.mxu0 %v2458_v5  ;;  %v65_v50 = vld [vmem:[%s3185_s0 + $0x20] sm:$0xff]  ;;  %v67_v52 = vld [vmem:[%s3185_s0 + $0x30] sm:$0xff]  ;;  %v68_v53 = vld [vmem:[%s3185_s0 + $0x38] sm:$0xff]  ;;  %p2728_p4 = scmp.lt.s32.totalorder %s2722_s1, %s2722_s1 }
  0x2c   :  { %2465 = vmatprep.subr.bf16.mxu1 %v2754_v0  ;;  %2474 = vmatprep.subr.bf16.mxu0 %v2754_v0 }
  0x2d   :  { %p2729_p5 = por %p2728_p4, %p2727_p3 }
  0x2e   :  { %2240 = vmatmul.mubr.msk.f32.vlgmr.msra.gmra.mrb[0].mxu0 %vm78_vm1, %v62_v11 }
  0x2f   :  { %2467 = vmatpush3.bf16.msra.mxu1 %v2859_v12  ;;  %2476 = vmatpush3.bf16.msra.mxu0 %v2846_v8  ;;  %p2730_p6 = pnand %p2729_p5, %p2723_p2 }
  0x30   :  { %2468 = vmatprep.subr.bf16.mxu1 %v2754_v0  ;;  %2477 = vmatprep.subr.bf16.mxu0 %v2754_v0 }
  0x31   :  { %2242 = vmatprep.mubr.msk.f32.mxu0 %vm78_vm1, %v63_v48 }
  0x32   :  { %2260 = vmatmul.mubr.f32.vlgmr.msra.gmra.mrb[0].mxu1 %v2756_v1  ;;  %2243 = vmatmul.mubr.msk.f32.gmra.mrb[2].mxu0 %vm78_vm1, %v64_v49 }
  0x33   :  { %2470 = vmatpush3.bf16.msra.mxu1 %v2846_v8  ;;  %2270 = vmatprep.mubr.msk.f32.mxu1 %vm2755_vm0, %v2756_v1 }
  0x34   :  { %2471 = vmatprep.subr.bf16.mxu1 %v2754_v0  ;;  %2479 = vmatpush3.bf16.msra.mxu0 %v2859_v12 }
  0x35   :  { %2486 = vmatprep.subr.bf16.mxu0 %v2754_v0  ;;  %2245 = vmatprep.mubr.msk.f32.mxu0 %vm78_vm1, %v65_v50 }
  0x36   :  { %2246 = vmatmul.mubr.msk.f32.gmra.mrb[4].mxu0 %vm78_vm1, %v66_v51 }
  0x37   :  { %2473 = vmatpush3.bf16.msra.mxu1 %v2859_v12  ;;  %2248 = vmatprep.mubr.msk.f32.mxu0 %vm78_vm1, %v67_v52 }
  0x38   :  { %2480 = vmatprep.subr.bf16.mxu1 %v2754_v0 }
  0x3a   :  { %2249 = vmatmul.mubr.msk.f32.gmra.mrb[6].mxu0 %vm78_vm1, %v68_v53 }
  0x3b   :  { %2281 = vmatprep.mubr.msk.f32.mxu0 %vm2755_vm0, %v2756_v1 }
 0x101   :  { %v2241_v14 = vpop.f32.mrb[0].mxu0 }
 0x102   :  { %v169_v15 = vpop.f32.mrb[1].mxu0  ;;  %v175_v34 = vadd.f32 %v2241_v14, %v2880_v13 }
 0x103   :  { %v170_v16 = vadd.f32 %v2880_v13, %v169_v15 }
 0x105   :  { %v291_v17 = vpop.f32.mrb[0].mxu1  ;;  %v2244_v57 = vpop.f32.mrb[2].mxu0 }
 0x106   :  { %v295_v18 = vadd.f32 %v291_v17, %v170_v16  ;;  %v2261_v19 = vpop.f32.mrb[1].mxu1  ;;  %v179_v58 = vpop.f32.mrb[3].mxu0 }
 0x107   :  { %v180_v2 = vadd.f32 %v2880_v13, %v179_v58 }
 0x108   :  { %2582 = vtanh.f32 %v295_v18  ;;  %v296_v21 = vmul.f32 0.5, %v295_v18 }
 0x109   :  { %v2926_v59 = vpop.f32.mrb[4].mxu0 }
 0x10a   :  { %2584 = vtanh.f32 %v296_v21  ;;  %v2928_v60 = vpop.f32.mrb[5].mxu0 }
 0x10d   :  { %v2930_v61 = vpop.f32.mrb[6].mxu0 }
 0x10e   :  { %v2932_v62 = vpop.f32.mrb[7].mxu0 }
 0x112   :  { %v2583_v20 = vpop.eup %2582 }
 0x113   :  { %303 = vrot.lane.b32.xlu0 %v2583_v20, %s2757_s25 }
 0x114   :  { %v2585_v22 = vpop.eup %2584 }
 0x115   :  { %v298_v23 = vmul.f32 0.5, %v2585_v22 }
 0x117   :  { %v299_v24 = vadd.f32 0.5, %v298_v23  ;;  %v185_v23 = vadd.f32 %v2244_v57, %v2880_v13 }
 0x119   :  { %v301_v27 = vmul.f32 0.0, %v299_v24 }
 0x185   :  { %v304_v25 = vpop.permute.xlu0 %303 }
 0x186   :  { %v306_v26 = vmul.f32 %v304_v25, %v299_v24 }
 0x188   :  { %308 = vrot.lane.b32.xlu0 %v306_v26, %s2758_s3 }
 0x1fa   :  { %v309_v28 = vpop.permute.xlu0 %308 }
 0x1fb   :  { %v311_v29 = vadd.f32 %v309_v28, %v301_v27 }
 0x1fd   :  { %2586 = vtanh.f32 %v311_v29 }
 0x207   :  { %v2587_v30 = vpop.eup %2586 }
 0x208   :  { %314 = vrot.lane.b32.xlu1 %v2587_v30, %s2757_s25 }
 0x27a   :  { %v315_v31 = vpop.permute.xlu1 %314 }
 0x27b   :  { %v317_v32 = vmul.f32 %v315_v31, %v299_v24 }
 0x27d   :  { %319 = vrot.lane.b32.xlu1 %v317_v32, %s2758_s3 }
 0x2ef   :  { %v320_v33 = vpop.permute.xlu1 %319 }
 0x2f0   :  { %322 = vst.msk [vmem:[#allocation3] sm:$0xff] %vm221_vm2, %v320_v33  ;;  %2271 = vmatmul.mubr.msk.f32.vlgmr.msra.gmra.mrb[2].mxu1 %vm221_vm2, %v320_v33 }
 0x2f1   :  { %2482 = vmatpush3.bf16.msra.mxu1 %v2846_v8  ;;  %2292 = vmatprep.mubr.msk.f32.mxu1 %vm2755_vm0, %v2756_v1 }
 0x2f2   :  { %2483 = vmatprep.subr.bf16.mxu1 %v2754_v0 }
 0x2f5   :  { %2485 = vmatpush3.bf16.msra.mxu1 %v2859_v12 }
 0x2f6   :  { %2492 = vmatprep.subr.bf16.mxu1 %v2754_v0 }
 0x3c3   :  { %v393_v35 = vpop.f32.mrb[2].mxu1 }
 0x3c4   :  { %v397_v36 = vadd.f32 %v393_v35, %v175_v34  ;;  %v2272_v37 = vpop.f32.mrb[3].mxu1 }
 0x3c6   :  { %2588 = vtanh.f32 %v397_v36  ;;  %v398_v39 = vmul.f32 0.5, %v397_v36 }
 0x3c8   :  { %2590 = vtanh.f32 %v398_v39 }
 0x3d0   :  { %v2589_v38 = vpop.eup %2588 }
 0x3d1   :  { %405 = vrot.lane.b32.xlu0 %v2589_v38, %s2757_s25 }
 0x3d2   :  { %v2591_v40 = vpop.eup %2590 }
 0x3d3   :  { %v400_v41 = vmul.f32 0.5, %v2591_v40 }
 0x3d5   :  { %v401_v42 = vadd.f32 0.5, %v400_v41  ;;  %v190_v41 = vadd.f32 %v2880_v13, %v2928_v60  ;;  %v195_v60 = vadd.f32 %v2926_v59, %v2880_v13  ;;  %v1052_v59 = vld [vmem:[%s3189_s4] sm:$0xff] }
 0x3d7   :  { %v403_v45 = vmul.f32 %v401_v42, %v311_v29 }
 0x443   :  { %v406_v43 = vpop.permute.xlu0 %405 }
 0x444   :  { %v408_v44 = vmul.f32 %v406_v43, %v401_v42 }
 0x446   :  { %410 = vrot.lane.b32.xlu1 %v408_v44, %s2758_s3 }
 0x4b8   :  { %v411_v46 = vpop.permute.xlu1 %410 }
 0x4b9   :  { %v413_v47 = vadd.f32 %v411_v46, %v403_v45 }
 0x4bb   :  { %2592 = vtanh.f32 %v413_v47 }
 0x4c5   :  { %v2593_v54 = vpop.eup %2592 }
 0x4c6   :  { %416 = vrot.lane.b32.xlu0 %v2593_v54, %s2757_s25 }
 0x538   :  { %v417_v55 = vpop.permute.xlu0 %416 }
 0x539   :  { %v419_v56 = vmul.f32 %v417_v55, %v401_v42 }
 0x53b   :  { %421 = vrot.lane.b32.xlu1 %v419_v56, %s2758_s3 }
 0x5ad   :  { %v422_v63 = vpop.permute.xlu1 %421 }
 0x5ae   :  { %425 = vst.msk [vmem:[#allocation3 + $0x8] sm:$0xff] %vm221_vm2, %v422_v63  ;;  %2282 = vmatmul.mubr.msk.f32.vlgmr.msra.gmra.mrb[8].mxu0 %vm221_vm2, %v422_v63 }
 0x5af   :  { %2488 = vmatpush3.bf16.msra.mxu0 %v2846_v8  ;;  %2303 = vmatprep.mubr.msk.f32.mxu0 %vm2755_vm0, %v2756_v1 }
 0x5b0   :  { %2489 = vmatprep.subr.bf16.mxu0 %v2754_v0 }
 0x5b3   :  { %2491 = vmatpush3.bf16.msra.mxu0 %v2859_v12 }
 0x5b4   :  { %2498 = vmatprep.subr.bf16.mxu0 %v2754_v0 }
 0x681   :  { %v496_v3 = vpop.f32.mrb[8].mxu0 }
 0x682   :  { %v500_v4 = vadd.f32 %v496_v3, %v180_v2  ;;  %v2283_v5 = vpop.f32.mrb[9].mxu0 }
 0x684   :  { %2594 = vtanh.f32 %v500_v4  ;;  %v501_v7 = vmul.f32 0.5, %v500_v4 }
 0x686   :  { %2596 = vtanh.f32 %v501_v7 }
 0x68e   :  { %v2595_v6 = vpop.eup %2594 }
 0x68f   :  { %508 = vrot.lane.b32.xlu0 %v2595_v6, %s2757_s25 }
 0x690   :  { %v2597_v9 = vpop.eup %2596 }
 0x691   :  { %v503_v10 = vmul.f32 0.5, %v2597_v9 }
 0x693   :  { %v504_v11 = vadd.f32 0.5, %v503_v10 }
 0x695   :  { %v506_v16 = vmul.f32 %v504_v11, %v413_v47 }
 0x701   :  { %v509_v14 = vpop.permute.xlu0 %508 }
 0x702   :  { %v511_v15 = vmul.f32 %v509_v14, %v504_v11 }
 0x704   :  { %513 = vrot.lane.b32.xlu1 %v511_v15, %s2758_s3  ;;  %v1053_v15 = vld [vmem:[%s3189_s4 + $0x8] sm:$0xff] }
 0x776   :  { %v514_v17 = vpop.permute.xlu1 %513 }
 0x777   :  { %v516_v18 = vadd.f32 %v514_v17, %v506_v16  ;;  %v2510_v16 = vpack.c.bf16 %v1053_v15, %v1052_v59 }
 0x779   :  { %2598 = vtanh.f32 %v516_v18 }
 0x783   :  { %v2599_v19 = vpop.eup %2598 }
 0x784   :  { %519 = vrot.lane.b32.xlu0 %v2599_v19, %s2757_s25 }
 0x7f6   :  { %v520_v20 = vpop.permute.xlu0 %519 }
 0x7f7   :  { %v522_v21 = vmul.f32 %v520_v20, %v504_v11  ;;  %v1054_v20 = vld [vmem:[%s3189_s4 + $0x10] sm:$0xff] }
 0x7f9   :  { %524 = vrot.lane.b32.xlu1 %v522_v21, %s2758_s3  ;;  %v1055_v21 = vld [vmem:[%s3189_s4 + $0x18] sm:$0xff] }
 0x86b   :  { %v525_v22 = vpop.permute.xlu1 %524 }
 0x86c   :  { %528 = vst.msk [vmem:[#allocation3 + $0x10] sm:$0xff] %vm221_vm2, %v525_v22  ;;  %2293 = vmatmul.mubr.msk.f32.vlgmr.msra.gmra.mrb[4].mxu1 %vm221_vm2, %v525_v22  ;;  %v2514_v22 = vpack.c.bf16 %v1055_v21, %v1054_v20 }
 0x86d   :  { %2494 = vmatpush3.bf16.msra.mxu1 %v2846_v8  ;;  %2314 = vmatprep.mubr.msk.f32.mxu1 %vm2755_vm0, %v2756_v1 }
 0x86e   :  { %2495 = vmatprep.subr.bf16.mxu1 %v2754_v0 }
 0x871   :  { %2497 = vmatpush3.bf16.msra.mxu1 %v2859_v12 }
 0x872   :  { %2504 = vmatprep.subr.bf16.mxu1 %v2754_v0 }
 0x93f   :  { %v599_v24 = vpop.f32.mrb[4].mxu1 }
 0x940   :  { %v603_v25 = vadd.f32 %v599_v24, %v185_v23  ;;  %v2294_v26 = vpop.f32.mrb[5].mxu1  ;;  %v1044_v24 = vld [vmem:[#allocation3] sm:$0xff] }
 0x941   :  { %v1046_v26 = vld [vmem:[#allocation3 + $0x10] sm:$0xff] }
 0x942   :  { %2600 = vtanh.f32 %v603_v25  ;;  %v604_v28 = vmul.f32 0.5, %v603_v25  ;;  %v1045_v25 = vld [vmem:[#allocation3 + $0x8] sm:$0xff] }
 0x944   :  { %2602 = vtanh.f32 %v604_v28 }
 0x94c   :  { %v2601_v27 = vpop.eup %2600 }
 0x94d   :  { %611 = vrot.lane.b32.xlu0 %v2601_v27, %s2757_s25 }
 0x94e   :  { %v2603_v29 = vpop.eup %2602 }
 0x94f   :  { %v606_v30 = vmul.f32 0.5, %v2603_v29 }
 0x951   :  { %v607_v31 = vadd.f32 0.5, %v606_v30  ;;  %v200_v30 = vadd.f32 %v2880_v13, %v2932_v62 }
 0x953   :  { %v609_v34 = vmul.f32 %v607_v31, %v516_v18 }
 0x9bf   :  { %v612_v32 = vpop.permute.xlu0 %611 }
 0x9c0   :  { %v614_v33 = vmul.f32 %v612_v32, %v607_v31 }
 0x9c2   :  { %616 = vrot.lane.b32.xlu1 %v614_v33, %s2758_s3 }
 0xa34   :  { %v617_v35 = vpop.permute.xlu1 %616 }
 0xa35   :  { %v619_v36 = vadd.f32 %v617_v35, %v609_v34 }
 0xa37   :  { %2604 = vtanh.f32 %v619_v36 }
 0xa41   :  { %v2605_v37 = vpop.eup %2604 }
 0xa42   :  { %622 = vrot.lane.b32.xlu0 %v2605_v37, %s2757_s25 }
 0xab4   :  { %v623_v38 = vpop.permute.xlu0 %622 }
 0xab5   :  { %v625_v39 = vmul.f32 %v623_v38, %v607_v31 }
 0xab7   :  { %627 = vrot.lane.b32.xlu1 %v625_v39, %s2758_s3 }
 0xb29   :  { %v628_v40 = vpop.permute.xlu1 %627 }
 0xb2a   :  { %631 = vst.msk [vmem:[#allocation3 + $0x18] sm:$0xff] %vm221_vm2, %v628_v40  ;;  %2304 = vmatmul.mubr.msk.f32.vlgmr.msra.gmra.mrb[10].mxu0 %vm221_vm2, %v628_v40 }
 0xb2b   :  { %2500 = vmatpush3.bf16.msra.mxu0 %v2846_v8  ;;  %2325 = vmatprep.mubr.msk.f32.mxu0 %vm2755_vm0, %v2756_v1 }
 0xb2c   :  { %2501 = vmatprep.subr.bf16.mxu0 %v2754_v0 }
 0xb2f   :  { %2503 = vmatpush3.bf16.msra.mxu0 %v2859_v12 }
 0xb30   :  { %2511 = vmatprep.subr.bf16.mxu0 %v2510_v16 }
 0xb31   :  { %v1047_v27 = vld [vmem:[#allocation3 + $0x18] sm:$0xff] }
 0xbfd   :  { %v702_v42 = vpop.f32.mrb[10].mxu0 }
 0xbfe   :  { %v706_v43 = vadd.f32 %v702_v42, %v190_v41  ;;  %v2305_v44 = vpop.f32.mrb[11].mxu0 }
 0xc00   :  { %2606 = vtanh.f32 %v706_v43  ;;  %v707_v46 = vmul.f32 0.5, %v706_v43 }
 0xc02   :  { %2608 = vtanh.f32 %v707_v46 }
 0xc0a   :  { %v2607_v45 = vpop.eup %2606 }
 0xc0b   :  { %714 = vrot.lane.b32.xlu0 %v2607_v45, %s2757_s25 }
 0xc0c   :  { %v2609_v47 = vpop.eup %2608 }
 0xc0d   :  { %v709_v48 = vmul.f32 0.5, %v2609_v47 }
 0xc0f   :  { %v710_v49 = vadd.f32 0.5, %v709_v48 }
 0xc11   :  { %v712_v52 = vmul.f32 %v710_v49, %v619_v36 }
 0xc7d   :  { %v715_v50 = vpop.permute.xlu0 %714 }
 0xc7e   :  { %v717_v51 = vmul.f32 %v715_v50, %v710_v49  ;;  %v1200_v50 = vld [vmem:[%s3190_s5] sm:$0xff] }
 0xc80   :  { %719 = vrot.lane.b32.xlu1 %v717_v51, %s2758_s3  ;;  %v1201_v51 = vld [vmem:[%s3190_s5 + $0x8] sm:$0xff] }
 0xcf2   :  { %v720_v53 = vpop.permute.xlu1 %719 }
 0xcf3   :  { %v722_v54 = vadd.f32 %v720_v53, %v712_v52  ;;  %v3032_v52 = vpack.c.bf16 %v1201_v51, %v1200_v50  ;;  %v1202_v53 = vld [vmem:[%s3190_s5 + $0x10] sm:$0xff] }
 0xcf5   :  { %2610 = vtanh.f32 %v722_v54 }
 0xcff   :  { %v2611_v55 = vpop.eup %2610 }
 0xd00   :  { %725 = vrot.lane.b32.xlu0 %v2611_v55, %s2757_s25 }
 0xd72   :  { %v726_v56 = vpop.permute.xlu0 %725 }
 0xd73   :  { %v728_v57 = vmul.f32 %v726_v56, %v710_v49 }
 0xd75   :  { %730 = vrot.lane.b32.xlu1 %v728_v57, %s2758_s3 }
 0xde7   :  { %v731_v58 = vpop.permute.xlu1 %730 }
 0xde8   :  { %734 = vst.msk [vmem:[#allocation3 + $0x20] sm:$0xff] %vm221_vm2, %v731_v58  ;;  %2315 = vmatmul.mubr.msk.f32.vlgmr.msra.gmra.mrb[6].mxu1 %vm221_vm2, %v731_v58 }
 0xde9   :  { %2506 = vmatpush3.bf16.msra.mxu1 %v2846_v8  ;;  %2336 = vmatprep.mubr.msk.f32.mxu1 %vm2755_vm0, %v2756_v1 }
 0xdea   :  { %2507 = vmatprep.subr.bf16.mxu1 %v2754_v0 }
 0xded   :  { %2509 = vmatpush3.bf16.msra.mxu1 %v2859_v12 }
 0xdee   :  { %2518 = vmatprep.subr.bf16.mxu1 %v2754_v0 }
 0xdef   :  { %v1048_v28 = vld [vmem:[#allocation3 + $0x20] sm:$0xff] }
 0xebb   :  { %v805_v63 = vpop.f32.mrb[6].mxu1 }
 0xebc   :  { %v809_v2 = vadd.f32 %v805_v63, %v195_v60  ;;  %v2316_v3 = vpop.f32.mrb[7].mxu1  ;;  %v205_v63 = vadd.f32 %v2930_v61, %v2880_v13 }
 0xebe   :  { %2612 = vtanh.f32 %v809_v2  ;;  %v810_v8 = vmul.f32 0.5, %v809_v2 }
 0xec0   :  { %2614 = vtanh.f32 %v810_v8  ;;  %v3068_v8 = vld [vmem:[%s3191_s6] ss:$0 sm:$0xff] }
 0xec8   :  { %v2613_v4 = vpop.eup %2612 }
 0xec9   :  { %817 = vrot.lane.b32.xlu0 %v2613_v4, %s2757_s25 }
 0xeca   :  { %v2615_v5 = vpop.eup %2614 }
 0xecb   :  { %v812_v6 = vmul.f32 0.5, %v2615_v5 }
 0xecd   :  { %v813_v7 = vadd.f32 0.5, %v812_v6 }
 0xecf   :  { %v815_v12 = vmul.f32 %v813_v7, %v722_v54  ;;  %v1203_v54 = vld [vmem:[%s3190_s5 + $0x18] sm:$0xff] }
 0xed0   :  { %v3042_v55 = vpack.c.bf16 %v1203_v54, %v1202_v53 }
 0xf3b   :  { %v818_v9 = vpop.permute.xlu0 %817 }
 0xf3c   :  { %v820_v10 = vmul.f32 %v818_v9, %v813_v7 }
 0xf3e   :  { %822 = vrot.lane.b32.xlu1 %v820_v10, %s2758_s3 }
 0xfb0   :  { %v823_v11 = vpop.permute.xlu1 %822 }
 0xfb1   :  { %v825_v14 = vadd.f32 %v823_v11, %v815_v12 }
 0xfb3   :  { %2616 = vtanh.f32 %v825_v14 }
 0xfbd   :  { %v2617_v17 = vpop.eup %2616 }
 0xfbe   :  { %828 = vrot.lane.b32.xlu0 %v2617_v17, %s2757_s25 }
0x1030   :  { %v829_v18 = vpop.permute.xlu0 %828 }
0x1031   :  { %v831_v19 = vmul.f32 %v829_v18, %v813_v7 }
0x1033   :  { %833 = vrot.lane.b32.xlu1 %v831_v19, %s2758_s3 }
0x10a5   :  { %v834_v23 = vpop.permute.xlu1 %833 }
0x10a6   :  { %837 = vst.msk [vmem:[#allocation3 + $0x28] sm:$0xff] %vm221_vm2, %v834_v23  ;;  %2326 = vmatmul.mubr.msk.f32.vlgmr.msra.gmra.mrb[12].mxu0 %vm221_vm2, %v834_v23 }
0x10a7   :  { %2513 = vmatpush3.bf16.msra.mxu0 %v2510_v16  ;;  %2347 = vmatprep.mubr.msk.f32.mxu0 %vm221_vm2, %v1044_v24 }
0x10a8   :  { %2515 = vmatprep.subr.bf16.mxu0 %v2514_v22 }
0x10ab   :  { %2517 = vmatpush3.bf16.msra.mxu0 %v2514_v22 }
0x10ac   :  { %2530 = vmatprep.subr.bf16.mxu0 %v2754_v0 }
0x10ad   :  { %v1049_v29 = vld [vmem:[#allocation3 + $0x28] sm:$0xff] }
0x10ae   :  { %2348 = vmatmul.mubr.msk.f32.vlgmr.msra.gmra.mrb[14].mxu0 %vm221_vm2, %v1045_v25 }
0x10af   :  { %2350 = vmatprep.mubr.msk.f32.mxu0 %vm221_vm2, %v1046_v26  ;;  %2532 = vmatpush3.bf16.msra.mxu0 %v3032_v52 }
0x10b0   :  { %2533 = vmatprep.subr.bf16.mxu0 %v2754_v0 }
0x10b2   :  { %2351 = vmatmul.mubr.msk.f32.gmra.mrb[16].mxu0 %vm221_vm2, %v1047_v27 }
0x10b3   :  { %2353 = vmatprep.mubr.msk.f32.mxu0 %vm221_vm2, %v1048_v28  ;;  %2535 = vmatpush3.bf16.msra.mxu0 %v3042_v55 }
0x10b4   :  { %2542 = vmatprep.subr.bf16.mxu0 %v2754_v0 }
0x10b6   :  { %2354 = vmatmul.mubr.msk.f32.gmra.mrb[18].mxu0 %vm221_vm2, %v1049_v29 }
0x1179   :  { %v908_v31 = vpop.f32.mrb[12].mxu0 }
0x117a   :  { %v912_v32 = vadd.f32 %v908_v31, %v200_v30  ;;  %v2327_v33 = vpop.f32.mrb[13].mxu0 }
0x117c   :  { %2618 = vtanh.f32 %v912_v32  ;;  %v913_v41 = vmul.f32 0.5, %v912_v32 }
0x117e   :  { %2620 = vtanh.f32 %v913_v41 }
0x1181   :  { %v3010_v34 = vpop.f32.mrb[14].mxu0 }
0x1182   :  { %v1153_v35 = vpop.f32.mrb[15].mxu0 }
0x1183   :  { %v1154_v5 = vadd.f32 %v3068_v8, %v1153_v35 }
0x1185   :  { %v3012_v36 = vpop.f32.mrb[16].mxu0 }
0x1186   :  { %v2619_v37 = vpop.eup %2618  ;;  %v3014_v38 = vpop.f32.mrb[17].mxu0 }
0x1187   :  { %920 = vrot.lane.b32.xlu0 %v2619_v37, %s2757_s25  ;;  %v1159_v37 = vadd.f32 %v3010_v34, %v3068_v8 }
0x1188   :  { %v2621_v62 = vpop.eup %2620 }
0x1189   :  { %v3017_v39 = vpop.f32.mrb[18].mxu0  ;;  %v915_v42 = vmul.f32 0.5, %v2621_v62 }
0x118a   :  { %v3019_v40 = vpop.f32.mrb[19].mxu0 }
0x118b   :  { %v916_v43 = vadd.f32 0.5, %v915_v42 }
0x118d   :  { %v918_v46 = vmul.f32 %v916_v43, %v825_v14 }
0x11f9   :  { %v921_v44 = vpop.permute.xlu0 %920 }
0x11fa   :  { %v923_v45 = vmul.f32 %v921_v44, %v916_v43 }
0x11fc   :  { %925 = vrot.lane.b32.xlu1 %v923_v45, %s2758_s3 }
0x126e   :  { %v926_v47 = vpop.permute.xlu1 %925 }
0x126f   :  { %v3022_v48 = vadd.f32 %v926_v47, %v918_v46 }
0x1271   :  { %2622 = vtanh.f32 %v3022_v48 }
0x127b   :  { %v2623_v49 = vpop.eup %2622 }
0x127c   :  { %931 = vrot.lane.b32.xlu0 %v2623_v49, %s2757_s25 }
0x12ee   :  { %v932_v56 = vpop.permute.xlu0 %931 }
0x12ef   :  { %v934_v57 = vmul.f32 %v932_v56, %v916_v43 }
0x12f1   :  { %936 = vrot.lane.b32.xlu1 %v934_v57, %s2758_s3 }
0x1363   :  { %v937_v58 = vpop.permute.xlu1 %936 }
0x1364   :  { %940 = vst.msk [vmem:[#allocation3 + $0x30] sm:$0xff] %vm221_vm2, %v937_v58  ;;  %2337 = vmatmul.mubr.msk.f32.vlgmr.msra.gmra.mrb[8].mxu1 %vm221_vm2, %v937_v58 }
0x1365   :  { %2520 = vmatpush3.bf16.msra.mxu1 %v3032_v52  ;;  %2367 = vmatprep.mubr.msk.f32.mxu1 %vm2755_vm0, %v2756_v1 }
0x1366   :  { %2521 = vmatprep.subr.bf16.mxu1 %v2754_v0 }
0x1369   :  { %2523 = vmatpush3.bf16.msra.mxu1 %v3042_v55 }
0x136a   :  { %2524 = vmatprep.subr.bf16.mxu1 %v2754_v0 }
0x136b   :  { %v1050_v60 = vld [vmem:[#allocation3 + $0x30] sm:$0xff] }
0x136c   :  { %2368 = vmatmul.mubr.f32.vlgmr.msra.gmra.mrb[10].mxu1 %v2756_v1  ;;  %2356 = vmatprep.mubr.msk.f32.mxu0 %vm221_vm2, %v1050_v60 }
0x136d   :  { %2526 = vmatpush3.bf16.msra.mxu1 %v3032_v52  ;;  %2378 = vmatprep.mubr.msk.f32.mxu1 %vm2755_vm0, %v2756_v1 }
0x136e   :  { %2527 = vmatprep.subr.bf16.mxu1 %v2754_v0 }
0x1371   :  { %2529 = vmatpush3.bf16.msra.mxu1 %v3042_v55 }
0x1372   :  { %2536 = vmatprep.subr.bf16.mxu1 %v2754_v0 }
0x1437   :  { %v1011_v2 = vpop.f32.mrb[8].mxu1 }
0x1438   :  { %v1015_v3 = vadd.f32 %v1011_v2, %v205_v63  ;;  %v2338_v4 = vpop.f32.mrb[9].mxu1 }
0x143a   :  { %v1016_v20 = vmul.f32 0.5, %v1015_v3 }
0x143f   :  { %v1271_v6 = vpop.f32.mrb[10].mxu1 }
0x1440   :  { %v1275_v7 = vadd.f32 %v1271_v6, %v1154_v5  ;;  %v2369_v9 = vpop.f32.mrb[11].mxu1 }
0x1442   :  { %2624 = vtanh.f32 %v1275_v7  ;;  %v1276_v12 = vmul.f32 0.5, %v1275_v7 }
0x1444   :  { %2626 = vtanh.f32 %v1276_v12 }
0x144c   :  { %v2625_v10 = vpop.eup %2624 }
0x144d   :  { %1283 = vrot.lane.b32.xlu0 %v2625_v10, %s2757_s25 }
0x144e   :  { %v2627_v13 = vpop.eup %2626 }
0x144f   :  { %v1278_v61 = vmul.f32 0.5, %v2627_v13 }
0x1451   :  { %v1279_v11 = vadd.f32 0.5, %v1278_v61 }
0x1453   :  { %v1281_v15 = vmul.f32 0.0, %v1279_v11 }
0x14bf   :  { %v1284_v14 = vpop.permute.xlu0 %1283 }
0x14c0   :  { %v1286_v59 = vmul.f32 %v1284_v14, %v1279_v11 }
0x14c2   :  { %1288 = vrot.lane.b32.xlu1 %v1286_v59, %s2758_s3 }
0x1534   :  { %v1289_v16 = vpop.permute.xlu1 %1288 }
0x1535   :  { %v1291_v17 = vadd.f32 %v1289_v16, %v1281_v15 }
0x1537   :  { %2628 = vtanh.f32 %v1291_v17 }
0x1538   :  { %2630 = vtanh.f32 %v1015_v3  ;;  %v1164_v3 = vadd.f32 %v3068_v8, %v3014_v38 }
0x1539   :  { %2632 = vtanh.f32 %v1016_v20 }
0x1541   :  { %v2629_v18 = vpop.eup %2628 }
0x1542   :  { %1294 = vrot.lane.b32.xlu0 %v2629_v18, %s2757_s25  ;;  %v2631_v19 = vpop.eup %2630 }
0x1543   :  { %v2633_v21 = vpop.eup %2632 }
0x1544   :  { %v1018_v22 = vmul.f32 0.5, %v2633_v21 }
0x1546   :  { %1023 = vrot.lane.b32.xlu0 %v2631_v19, %s2757_s25  ;;  %v1019_v25 = vadd.f32 0.5, %v1018_v22  ;;  %v1169_v19 = vadd.f32 %v3012_v36, %v3068_v8 }
0x1548   :  { %v1021_v29 = vmul.f32 %v1019_v25, %v3022_v48 }
0x15b4   :  { %v1295_v23 = vpop.permute.xlu0 %1294 }
0x15b5   :  { %v1297_v24 = vmul.f32 %v1295_v23, %v1279_v11 }
0x15b7   :  { %1300 = vrot.lane.b32.xlu1 %v1297_v24, %s2758_s3 }
0x15b8   :  { %v1024_v26 = vpop.permute.xlu0 %1023 }
0x15b9   :  { %v1026_v27 = vmul.f32 %v1024_v26, %v1019_v25 }
0x15bb   :  { %1028 = vrot.lane.b32.xlu0 %v1026_v27, %s2758_s3 }
0x1629   :  { %v1301_v28 = vpop.permute.xlu1 %1300 }
0x162a   :  { %2379 = vmatmul.mubr.msk.f32.vlgmr.msra.gmra.mrb[12].mxu1 %vm221_vm2, %v1301_v28 }
0x162b   :  { %2538 = vmatpush3.bf16.msra.mxu1 %v3032_v52  ;;  %2400 = vmatprep.mubr.msk.f32.mxu1 %vm2755_vm0, %v2756_v1 }
0x162c   :  { %2539 = vmatprep.subr.bf16.mxu1 %v2754_v0 }
0x162d   :  { %v1029_v30 = vpop.permute.xlu0 %1028 }
0x162e   :  { %v1031_v31 = vadd.f32 %v1029_v30, %v1021_v29 }
0x162f   :  { %2541 = vmatpush3.bf16.msra.mxu1 %v3042_v55 }
0x1630   :  { %2634 = vtanh.f32 %v1031_v31  ;;  %2548 = vmatprep.subr.bf16.mxu1 %v2754_v0 }
0x163a   :  { %v2635_v32 = vpop.eup %2634 }
0x163b   :  { %1034 = vrot.lane.b32.xlu0 %v2635_v32, %s2757_s25 }
0x16ad   :  { %v1035_v33 = vpop.permute.xlu0 %1034 }
0x16ae   :  { %v1037_v35 = vmul.f32 %v1035_v33, %v1019_v25 }
0x16b0   :  { %1039 = vrot.lane.b32.xlu0 %v1037_v35, %s2758_s3 }
0x16fd   :  { %v1370_v41 = vpop.f32.mrb[12].mxu1 }
0x16fe   :  { %v1374_v62 = vadd.f32 %v1370_v41, %v1159_v37  ;;  %v2380_v42 = vpop.f32.mrb[13].mxu1  ;;  %v1174_v41 = vadd.f32 %v3068_v8, %v3019_v40 }
0x1700   :  { %2636 = vtanh.f32 %v1374_v62  ;;  %v1375_v46 = vmul.f32 0.5, %v1374_v62 }
0x1702   :  { %2638 = vtanh.f32 %v1375_v46 }
0x170a   :  { %v2637_v43 = vpop.eup %2636 }
0x170b   :  { %1382 = vrot.lane.b32.xlu1 %v2637_v43, %s2757_s25 }
0x170c   :  { %v2639_v47 = vpop.eup %2638 }
0x170d   :  { %v1377_v34 = vmul.f32 0.5, %v2639_v47 }
0x170f   :  { %v1378_v48 = vadd.f32 0.5, %v1377_v34 }
0x1711   :  { %v1380_v51 = vmul.f32 %v1378_v48, %v1291_v17 }
0x1722   :  { %v1040_v44 = vpop.permute.xlu0 %1039 }
0x1723   :  { %1043 = vst.msk [vmem:[#allocation3 + $0x38] sm:$0xff] %vm221_vm2, %v1040_v44 }
0x172a   :  { %v1051_v45 = vld [vmem:[#allocation3 + $0x38] sm:$0xff] }
0x172b   :  { %2357 = vmatmul.mubr.msk.f32.gmra.mrb[20].mxu0 %vm221_vm2, %v1051_v45 }
0x172c   :  { %2389 = vmatprep.mubr.msk.f32.mxu0 %vm2755_vm0, %v2756_v1 }
0x177d   :  { %v1383_v49 = vpop.permute.xlu1 %1382 }
0x177e   :  { %v1385_v50 = vmul.f32 %v1383_v49, %v1378_v48 }
0x1780   :  { %1387 = vrot.lane.b32.xlu1 %v1385_v50, %s2758_s3 }
0x17f2   :  { %v1388_v53 = vpop.permute.xlu1 %1387 }
0x17f3   :  { %v1390_v54 = vadd.f32 %v1388_v53, %v1380_v51 }
0x17f5   :  { %2640 = vtanh.f32 %v1390_v54 }
0x17fe   :  { %v3095_v56 = vpop.f32.mrb[20].mxu0 }
0x17ff   :  { %v2641_v57 = vpop.eup %2640  ;;  %v3097_v58 = vpop.f32.mrb[21].mxu0 }
0x1800   :  { %1393 = vrot.lane.b32.xlu1 %v2641_v57, %s2757_s25 }
0x1872   :  { %v1394_v60 = vpop.permute.xlu1 %1393 }
0x1873   :  { %v1396_v63 = vmul.f32 %v1394_v60, %v1378_v48 }
0x1875   :  { %1399 = vrot.lane.b32.xlu1 %v1396_v63, %s2758_s3  ;;  %v1179_v63 = vadd.f32 %v3017_v39, %v3068_v8 }
0x18e7   :  { %v1400_v2 = vpop.permute.xlu1 %1399 }
0x18e8   :  { %2390 = vmatmul.mubr.msk.f32.vlgmr.msra.gmra.mrb[22].mxu0 %vm221_vm2, %v1400_v2 }
0x18e9   :  { %2544 = vmatpush3.bf16.msra.mxu0 %v3032_v52  ;;  %2411 = vmatprep.mubr.msk.f32.mxu0 %vm2755_vm0, %v2756_v1 }
0x18ea   :  { %2545 = vmatprep.subr.bf16.mxu0 %v2754_v0 }
0x18ed   :  { %2547 = vmatpush3.bf16.msra.mxu0 %v3042_v55 }
0x18ee   :  { %2554 = vmatprep.subr.bf16.mxu0 %v2754_v0 }
0x19bb   :  { %v1469_v4 = vpop.f32.mrb[22].mxu0 }
0x19bc   :  { %v1473_v5 = vadd.f32 %v1469_v4, %v1164_v3  ;;  %v2391_v6 = vpop.f32.mrb[23].mxu0 }
0x19be   :  { %2642 = vtanh.f32 %v1473_v5  ;;  %v1474_v9 = vmul.f32 0.5, %v1473_v5 }
0x19c0   :  { %2644 = vtanh.f32 %v1474_v9 }
0x19c8   :  { %v2643_v7 = vpop.eup %2642 }
0x19c9   :  { %1481 = vrot.lane.b32.xlu0 %v2643_v7, %s2757_s25 }
0x19ca   :  { %v2645_v10 = vpop.eup %2644 }
0x19cb   :  { %v1476_v12 = vmul.f32 0.5, %v2645_v10 }
0x19cd   :  { %v1477_v13 = vadd.f32 0.5, %v1476_v12 }
0x19cf   :  { %v1479_v14 = vmul.f32 %v1477_v13, %v1390_v54 }
0x1a3b   :  { %v1482_v61 = vpop.permute.xlu0 %1481 }
0x1a3c   :  { %v1484_v11 = vmul.f32 %v1482_v61, %v1477_v13 }
0x1a3e   :  { %1486 = vrot.lane.b32.xlu1 %v1484_v11, %s2758_s3 }
0x1ab0   :  { %v1487_v59 = vpop.permute.xlu1 %1486 }
0x1ab1   :  { %v1489_v15 = vadd.f32 %v1487_v59, %v1479_v14 }
0x1ab3   :  { %2646 = vtanh.f32 %v1489_v15 }
0x1abd   :  { %v2647_v38 = vpop.eup %2646 }
0x1abe   :  { %1492 = vrot.lane.b32.xlu0 %v2647_v38, %s2757_s25 }
0x1b30   :  { %v1493_v16 = vpop.permute.xlu0 %1492 }
0x1b31   :  { %v1495_v17 = vmul.f32 %v1493_v16, %v1477_v13 }
0x1b33   :  { %1498 = vrot.lane.b32.xlu1 %v1495_v17, %s2758_s3 }
0x1ba5   :  { %v1499_v18 = vpop.permute.xlu1 %1498 }
0x1ba6   :  { %2401 = vmatmul.mubr.msk.f32.vlgmr.msra.gmra.mrb[14].mxu1 %vm221_vm2, %v1499_v18 }
0x1ba7   :  { %2550 = vmatpush3.bf16.msra.mxu1 %v3032_v52  ;;  %2422 = vmatprep.mubr.msk.f32.mxu1 %vm2755_vm0, %v2756_v1 }
0x1ba8   :  { %2551 = vmatprep.subr.bf16.mxu1 %v2754_v0 }
0x1bab   :  { %2553 = vmatpush3.bf16.msra.mxu1 %v3042_v55 }
0x1bac   :  { %2560 = vmatprep.subr.bf16.mxu1 %v2754_v0 }
0x1c79   :  { %v1568_v20 = vpop.f32.mrb[14].mxu1 }
0x1c7a   :  { %v1572_v21 = vadd.f32 %v1568_v20, %v1169_v19  ;;  %v2402_v22 = vpop.f32.mrb[15].mxu1 }
0x1c7c   :  { %2648 = vtanh.f32 %v1572_v21  ;;  %v1573_v24 = vmul.f32 0.5, %v1572_v21 }
0x1c7e   :  { %2650 = vtanh.f32 %v1573_v24 }
0x1c86   :  { %v2649_v23 = vpop.eup %2648 }
0x1c87   :  { %1580 = vrot.lane.b32.xlu0 %v2649_v23, %s2757_s25 }
0x1c88   :  { %v2651_v25 = vpop.eup %2650 }
0x1c89   :  { %v1575_v26 = vmul.f32 0.5, %v2651_v25 }
0x1c8b   :  { %v1576_v27 = vadd.f32 0.5, %v1575_v26 }
0x1c8d   :  { %v1578_v30 = vmul.f32 %v1576_v27, %v1489_v15  ;;  %v1184_v15 = vadd.f32 %v3068_v8, %v3097_v58 }
0x1cf9   :  { %v1581_v28 = vpop.permute.xlu0 %1580 }
0x1cfa   :  { %v1583_v29 = vmul.f32 %v1581_v28, %v1576_v27 }
0x1cfc   :  { %1585 = vrot.lane.b32.xlu1 %v1583_v29, %s2758_s3 }
0x1d6e   :  { %v1586_v31 = vpop.permute.xlu1 %1585 }
0x1d6f   :  { %v1588_v32 = vadd.f32 %v1586_v31, %v1578_v30  ;;  %v1189_v30 = vadd.f32 %v3095_v56, %v3068_v8  ;;  %v1991_v8 = vld [vmem:[#allocation7] sm:$0xff]  ;;  %v1992_v56 = vld [vmem:[#allocation7 + $0x8] sm:$0xff] }
0x1d71   :  { %2652 = vtanh.f32 %v1588_v32 }
0x1d7b   :  { %v2653_v36 = vpop.eup %2652 }
0x1d7c   :  { %1591 = vrot.lane.b32.xlu0 %v2653_v36, %s2757_s25 }
0x1dee   :  { %v1592_v33 = vpop.permute.xlu0 %1591 }
0x1def   :  { %v1594_v35 = vmul.f32 %v1592_v33, %v1576_v27 }
0x1df1   :  { %1597 = vrot.lane.b32.xlu1 %v1594_v35, %s2758_s3 }
0x1e63   :  { %v1598_v37 = vpop.permute.xlu1 %1597 }
0x1e64   :  { %2412 = vmatmul.mubr.msk.f32.vlgmr.msra.gmra.mrb[24].mxu0 %vm221_vm2, %v1598_v37 }
0x1e65   :  { %2556 = vmatpush3.bf16.msra.mxu0 %v3032_v52  ;;  %2433 = vmatprep.mubr.msk.f32.mxu0 %vm2755_vm0, %v2756_v1 }
0x1e66   :  { %2557 = vmatprep.subr.bf16.mxu0 %v2754_v0 }
0x1e69   :  { %2559 = vmatpush3.bf16.msra.mxu0 %v3042_v55 }
0x1e6a   :  { %2566 = vmatprep.subr.bf16.mxu0 %v2754_v0 }
0x1f37   :  { %v1667_v62 = vpop.f32.mrb[24].mxu0 }
0x1f38   :  { %v1671_v42 = vadd.f32 %v1667_v62, %v1174_v41  ;;  %v2413_v43 = vpop.f32.mrb[25].mxu0 }
0x1f3a   :  { %2654 = vtanh.f32 %v1671_v42  ;;  %v1672_v45 = vmul.f32 0.5, %v1671_v42 }
0x1f3c   :  { %2656 = vtanh.f32 %v1672_v45 }
0x1f44   :  { %v2655_v44 = vpop.eup %2654 }
0x1f45   :  { %1679 = vrot.lane.b32.xlu0 %v2655_v44, %s2757_s25 }
0x1f46   :  { %v2657_v46 = vpop.eup %2656 }
0x1f47   :  { %v1674_v47 = vmul.f32 0.5, %v2657_v46 }
0x1f49   :  { %v1675_v34 = vadd.f32 0.5, %v1674_v47  ;;  %v1993_v47 = vld [vmem:[#allocation7 + $0x10] sm:$0xff] }
0x1f4b   :  { %v1677_v50 = vmul.f32 %v1675_v34, %v1588_v32 }
0x1fb7   :  { %v1680_v48 = vpop.permute.xlu0 %1679 }
0x1fb8   :  { %v1682_v49 = vmul.f32 %v1680_v48, %v1675_v34  ;;  %v1994_v48 = vld [vmem:[#allocation7 + $0x18] sm:$0xff] }
0x1fba   :  { %1684 = vrot.lane.b32.xlu1 %v1682_v49, %s2758_s3  ;;  %v2570_v49 = vpack.c.bf16 %v1994_v48, %v1993_v47 }
0x202c   :  { %v1685_v51 = vpop.permute.xlu1 %1684 }
0x202d   :  { %v1687_v53 = vadd.f32 %v1685_v51, %v1677_v50 }
0x202f   :  { %2658 = vtanh.f32 %v1687_v53 }
0x2039   :  { %v2659_v40 = vpop.eup %2658 }
0x203a   :  { %1690 = vrot.lane.b32.xlu0 %v2659_v40, %s2757_s25 }
0x20ac   :  { %v1691_v54 = vpop.permute.xlu0 %1690 }
0x20ad   :  { %v1693_v57 = vmul.f32 %v1691_v54, %v1675_v34  ;;  %v2567_v34 = vpack.c.bf16 %v1992_v56, %v1991_v8  ;;  %v2126_v54 = vld [vmem:[%s3193_s8] ss:$0 sm:$0xff] }
0x20af   :  { %1696 = vrot.lane.b32.xlu1 %v1693_v57, %s2758_s3 }
0x2121   :  { %v1697_v60 = vpop.permute.xlu1 %1696 }
0x2122   :  { %2423 = vmatmul.mubr.msk.f32.vlgmr.msra.gmra.mrb[16].mxu1 %vm221_vm2, %v1697_v60 }
0x2123   :  { %2562 = vmatpush3.bf16.msra.mxu1 %v3032_v52  ;;  %2444 = vmatprep.mubr.msk.f32.mxu1 %vm2755_vm0, %v2756_v1 }
0x2124   :  { %2563 = vmatprep.subr.bf16.mxu1 %v2754_v0 }
0x2127   :  { %2565 = vmatpush3.bf16.msra.mxu1 %v3042_v55 }
0x21f5   :  { %v1766_v2 = vpop.f32.mrb[16].mxu1 }
0x21f6   :  { %v1770_v3 = vadd.f32 %v1766_v2, %v1179_v63  ;;  %v2424_v4 = vpop.f32.mrb[17].mxu1 }
0x21f8   :  { %2660 = vtanh.f32 %v1770_v3  ;;  %v1771_v6 = vmul.f32 0.5, %v1770_v3 }
0x21fa   :  { %2662 = vtanh.f32 %v1771_v6 }
0x2202   :  { %v2661_v5 = vpop.eup %2660 }
0x2203   :  { %1778 = vrot.lane.b32.xlu0 %v2661_v5, %s2757_s25 }
0x2204   :  { %v2663_v52 = vpop.eup %2662 }
0x2205   :  { %v1773_v7 = vmul.f32 0.5, %v2663_v52 }
0x2207   :  { %v1774_v9 = vadd.f32 0.5, %v1773_v7 }
0x2209   :  { %v1776_v55 = vmul.f32 %v1774_v9, %v1687_v53 }
0x2275   :  { %v1779_v10 = vpop.permute.xlu0 %1778 }
0x2276   :  { %v1781_v12 = vmul.f32 %v1779_v10, %v1774_v9 }
0x2278   :  { %1783 = vrot.lane.b32.xlu1 %v1781_v12, %s2758_s3 }
0x22ea   :  { %v1784_v13 = vpop.permute.xlu1 %1783 }
0x22eb   :  { %v1786_v61 = vadd.f32 %v1784_v13, %v1776_v55 }
0x22ed   :  { %2664 = vtanh.f32 %v1786_v61 }
0x22f7   :  { %v2665_v39 = vpop.eup %2664 }
0x22f8   :  { %1789 = vrot.lane.b32.xlu0 %v2665_v39, %s2757_s25 }
0x236a   :  { %v1790_v11 = vpop.permute.xlu0 %1789 }
0x236b   :  { %v1792_v14 = vmul.f32 %v1790_v11, %v1774_v9 }
0x236d   :  { %1795 = vrot.lane.b32.xlu1 %v1792_v14, %s2758_s3 }
0x23df   :  { %v1796_v59 = vpop.permute.xlu1 %1795 }
0x23e0   :  { %2434 = vmatmul.mubr.msk.f32.vlgmr.msra.gmra.mrb[26].mxu0 %vm221_vm2, %v1796_v59 }
0x23e1   :  { %2455 = vmatprep.mubr.msk.f32.mxu0 %vm2755_vm0, %v2756_v1  ;;  %2568 = vmatpush3.bf16.msra.mxu0 %v2567_v34 }
0x23e2   :  { %2569 = vmatprep.subr.bf16.mxu0 %v2754_v0 }
0x23e5   :  { %2571 = vmatpush3.bf16.msra.mxu0 %v2570_v49 }
0x24b3   :  { %v1865_v38 = vpop.f32.mrb[26].mxu0 }
0x24b4   :  { %v1869_v16 = vadd.f32 %v1865_v38, %v1184_v15  ;;  %v2435_v17 = vpop.f32.mrb[27].mxu0 }
0x24b6   :  { %2666 = vtanh.f32 %v1869_v16  ;;  %v1870_v19 = vmul.f32 0.5, %v1869_v16 }
0x24b8   :  { %2668 = vtanh.f32 %v1870_v19 }
0x24c0   :  { %v2667_v18 = vpop.eup %2666 }
0x24c1   :  { %1877 = vrot.lane.b32.xlu0 %v2667_v18, %s2757_s25 }
0x24c2   :  { %v2669_v20 = vpop.eup %2668 }
0x24c3   :  { %v1872_v21 = vmul.f32 0.5, %v2669_v20 }
0x24c5   :  { %v1873_v22 = vadd.f32 0.5, %v1872_v21 }
0x24c7   :  { %v1875_v1 = vmul.f32 %v1873_v22, %v1786_v61 }
0x2533   :  { %v1878_v23 = vpop.permute.xlu0 %1877 }
0x2534   :  { %v1880_v24 = vmul.f32 %v1878_v23, %v1873_v22 }
0x2536   :  { %1882 = vrot.lane.b32.xlu1 %v1880_v24, %s2758_s3 }
0x25a8   :  { %v1883_v25 = vpop.permute.xlu1 %1882 }
0x25a9   :  { %v1885_v26 = vadd.f32 %v1883_v25, %v1875_v1 }
0x25ab   :  { %2670 = vtanh.f32 %v1885_v26 }
0x25b5   :  { %v2671_v58 = vpop.eup %2670 }
0x25b6   :  { %1888 = vrot.lane.b32.xlu0 %v2671_v58, %s2757_s25 }
0x2628   :  { %v1889_v27 = vpop.permute.xlu0 %1888 }
0x2629   :  { %v1891_v28 = vmul.f32 %v1889_v27, %v1873_v22 }
0x262b   :  { %1894 = vrot.lane.b32.xlu1 %v1891_v28, %s2758_s3 }
0x269d   :  { %v1895_v29 = vpop.permute.xlu1 %1894 }
0x269e   :  { %2445 = vmatmul.mubr.msk.f32.vlgmr.msra.gmra.mrb[18].mxu1 %vm221_vm2, %v1895_v29 }
0x2771   :  { %v1964_v31 = vpop.f32.mrb[18].mxu1 }
0x2772   :  { %v1968_v32 = vadd.f32 %v1964_v31, %v1189_v30  ;;  %v2446_v36 = vpop.f32.mrb[19].mxu1 }
0x2774   :  { %2672 = vtanh.f32 %v1968_v32  ;;  %v1969_v35 = vmul.f32 0.5, %v1968_v32 }
0x2776   :  { %2674 = vtanh.f32 %v1969_v35 }
0x277e   :  { %v2673_v33 = vpop.eup %2672 }
0x277f   :  { %1976 = vrot.lane.b32.xlu0 %v2673_v33, %s2757_s25 }
0x2780   :  { %v2675_v37 = vpop.eup %2674 }
0x2781   :  { %v1971_v41 = vmul.f32 0.5, %v2675_v37 }
0x2783   :  { %v1972_v62 = vadd.f32 0.5, %v1971_v41 }
0x2785   :  { %v1974_v44 = vmul.f32 %v1972_v62, %v1885_v26 }
0x27f1   :  { %v1977_v42 = vpop.permute.xlu0 %1976 }
0x27f2   :  { %v1979_v43 = vmul.f32 %v1977_v42, %v1972_v62 }
0x27f4   :  { %1981 = vrot.lane.b32.xlu1 %v1979_v43, %s2758_s3 }
0x2866   :  { %v1982_v45 = vpop.permute.xlu1 %1981 }
0x2867   :  { %v1984_v46 = vadd.f32 %v1982_v45, %v1974_v44 }
0x2869   :  { %2676 = vtanh.f32 %v1984_v46 }
0x2873   :  { %v2677_v50 = vpop.eup %2676 }
0x2874   :  { %1987 = vrot.lane.b32.xlu0 %v2677_v50, %s2757_s25 }
0x28e6   :  { %v1988_v51 = vpop.permute.xlu0 %1987 }
0x28e7   :  { %v1990_v53 = vmul.f32 %v1988_v51, %v1972_v62 }
0x28e9   :  { %2003 = vrot.lane.b32.xlu1 %v1990_v53, %s2758_s3 }
0x295b   :  { %v2004_v40 = vpop.permute.xlu1 %2003 }
0x295c   :  { %2456 = vmatmul.mubr.msk.f32.vlgmr.msra.gmra.mrb[28].mxu0 %vm221_vm2, %v2004_v40 }
0x2a2f   :  { %v2073_v57 = vpop.f32.mrb[28].mxu0 }
0x2a30   :  { %v2074_v60 = vadd.f32 %v2126_v54, %v2073_v57  ;;  %v2457_v0 = vpop.f32.mrb[29].mxu0 }
0x2a32   :  { %2077 = vst [vmem:[#allocation9] sm:$0xff] %v2074_v60 }
0x2a33   :  { %2733 = shalt.err (!%p2730_p6)
}
0x2a34   :  { %s2734_s10 = scalar_lea.hbm %s3194_s9, 128 }
0x2a35   :  { %p2735_p7 = scmp.ne.s32.totalorder %s3194_s9, %s2734_s10  ;;  %p2738_p8 = scmp.lt.u32.totalorder %s2734_s10, %s3194_s9 }
0x2a37   :  { %p2740_p9 = pnand %p2738_p8, %p2735_p7 }
0x2a39   :  { %2743 = shalt.err (!%p2740_p9)
}
0x2a3a   :  { %2087 = dma.vmem_to_hbm [thread:$0]  %s2085_s12, 128, %s3194_s9, [#allocation6]  }
0x2a3b   :  { %2748 = dma.done.wait [#allocation6], 128  }
0x2a3c   :  { %2749 = vsyncadd [#allocation6], 4294967168 }
0x2a3d   :  { %2091 = vsyncpa [#allocation5], 1 }
0x2a3e   :  { %2092 = vsyncpa [#allocation8], 1 }
0x2a3f   :  { %2093 = vsyncpa [#allocation6], 1 }

</bundles_post_ra>
